<compile_context>
chip_gen: v7x
topology: tpu7x:2x2x1
jax: 0.10.0
libtpu: 0.0.40
codegen_flags: <defaults>
</compile_context>

<pallas_src>
import functools

import jax
import jax.numpy as jnp
from jax.experimental import pallas as pl
from jax.experimental.pallas import tpu as pltpu


def _round_up(x, m):
    return ((x + m - 1) // m) * m


# ---------------------------------------------------------------------------
# Kernel
# ---------------------------------------------------------------------------
def _attention_kernel(q_ref, c_ref, w_in_ref, w_out_mix_ref, w_out_q_ref,
                      out_ref, wts_ref, *, n_keys, mask_keys):
    """Fused Attention forward for one (batch-tile, Lq-tile) grid step.

    q_ref        : (TB, TQ, Dp)    query tile         (D padded to 128 lanes)
    c_ref        : (TB, Lkp, Dp)   full context       (Lk padded to 128 lanes)
    w_in_ref     : (Dp, Dp)        linear_in.weight.T
    w_out_mix_ref: (Dp, Dp)        linear_out.weight.T rows applied to `mix`
    w_out_q_ref  : (Dp, Dp)        linear_out.weight.T rows applied to `q'`
    out_ref      : (TB, TQ, Dp)
    wts_ref      : (TB, TQ, Lkp)
    """
    TB = q_ref.shape[0]
    c_dtype = c_ref.dtype

    w_in = w_in_ref[...]
    w_out_mix = w_out_mix_ref[...]
    w_out_q = w_out_q_ref[...]
    w_dtype = w_out_mix.dtype

    # Static unroll over the fused batch tile: every matmul below is a plain
    # 2-D MXU call with M = TQ (no batched-einsum / reshape relayouts).
    for b in range(TB):
        q = q_ref[b]                                        # (TQ, Dp)
        c = c_ref[b]                                        # (Lkp, Dp)

        # --- general attention: q' = q @ W_in (f32 accumulation) -------------
        qg_f32 = jnp.dot(q, w_in, preferred_element_type=jnp.float32)

        # --- scores: contract the D axis of both operands (no explicit c.T) --
        scores = jax.lax.dot_general(
            qg_f32.astype(c_dtype), c, (((1,), (1,)), ((), ())),
            preferred_element_type=jnp.float32)             # (TQ, Lkp)

        if mask_keys:                                       # padded keys -> -inf
            k_idx = jax.lax.broadcasted_iota(jnp.int32, scores.shape, 1)
            scores = jnp.where(k_idx < n_keys, scores, -1e30)

        # --- numerically stable softmax along the (lane-dense) key axis ------
        # TODO(synk): when inputs are bf16 on v6e/v7x, compute exp / weights in
        # bf16 after the f32 max-subtract (keep f32 on v5e, no bf16 EUP there).
        m = jnp.max(scores, axis=-1, keepdims=True)
        e = jnp.exp(scores - m)
        denom = jnp.sum(e, axis=-1, keepdims=True)
        r = pl.reciprocal(denom, approx=True)               # EUP vrcp (free slot)
        r = r * (2.0 - denom * r)                           # one Newton step -> ~f32
        w = e * r                                           # (TQ, Lkp) f32
        w_lo = w.astype(c_dtype)                            # single cast, reused

        # --- mix = weights @ context (f32 accumulate) -------------------------
        mix = jnp.dot(w_lo, c, preferred_element_type=jnp.float32)   # (TQ, Dp)

        # --- output = tanh([mix ; q'] @ W_out) without materializing concat ---
        out = jnp.dot(mix.astype(w_dtype), w_out_mix,
                      preferred_element_type=jnp.float32)
        out = out + jnp.dot(qg_f32.astype(w_dtype), w_out_q,
                            preferred_element_type=jnp.float32)
        out = jnp.tanh(out)

        out_ref[b] = out.astype(out_ref.dtype)
        wts_ref[b] = w_lo.astype(wts_ref.dtype)


# ---------------------------------------------------------------------------
# Wrapper: padding, tile selection, pallas_call
# ---------------------------------------------------------------------------
def _vmem_estimate_bytes(TB, TQ, Lkp, Dp, in_sz, wts_sz):
    q_blk = TB * TQ * Dp * in_sz
    c_blk = TB * Lkp * Dp * in_sz
    o_blk = TB * TQ * Dp * in_sz
    w_blk = TB * TQ * Lkp * wts_sz
    params = 3 * Dp * Dp * in_sz
    f32 = 4
    # In-kernel f32 temporaries: scores / exp / weights + qg / mix / out (+cast).
    temps = 3 * TB * TQ * Lkp * f32 + 4 * TB * TQ * Dp * f32
    return 2 * (q_blk + c_blk + o_blk + w_blk) + 2 * params + temps


def _physical_vmem_bytes():
    try:
        return int(pltpu.get_tpu_info().vmem_capacity_bytes)
    except Exception:
        pass
    try:
        kind = jax.devices()[0].device_kind.lower()
        if "v5" in kind or "v6" in kind:
            return 128 * 1024 * 1024
    except Exception:
        pass
    return 64 * 1024 * 1024          # conservative (v7x-sized)


def attention_forward(query, context, w_in, w_out, *, tq_cap=512, tb_cap=8):
    """query: (B, Lq, D), context: (B, Lk, D), w_in: (D, D), w_out: (2D, D).
    Returns (output (B, Lq, D), weights (B, Lq, Lk))."""
    B, Lq, D = query.shape
    Lk = context.shape[1]

    in_sz = jnp.dtype(query.dtype).itemsize
    wts_dtype = query.dtype              # attention weights follow the input dtype
    wts_sz = jnp.dtype(wts_dtype).itemsize

    # --- lane-dense layouts: pad D and Lk up to multiples of 128 --------------
    Dp = _round_up(D, 128)
    Lkp = _round_up(Lk, 128)

    # --- per-generation VMEM sizing -------------------------------------------
    phys_vmem = _physical_vmem_bytes()
    if phys_vmem >= 96 * 1024 * 1024:    # v5e / v6e: 128 MiB physical VMEM
        budget = 80 * 1024 * 1024
        vmem_limit = 96 * 1024 * 1024
    else:                                 # v7x: 64 MiB physical VMEM
        budget = 36 * 1024 * 1024
        vmem_limit = 48 * 1024 * 1024

    def fits(tb, tq):
        return _vmem_estimate_bytes(tb, tq, Lkp, Dp, in_sz, wts_sz) <= budget

    # --- TQ first: whole Lq, else a multiple-of-8 divisor of Lq, else pad -----
    if Lq <= tq_cap and fits(1, Lq):
        TQ = Lq                                        # single full tile, no padding
    else:
        TQ = 0
        start = min(Lq, tq_cap) - (min(Lq, tq_cap) % 8)
        for d in range(start, 7, -8):                  # largest mult-of-8 divisor
            if Lq % d == 0 and fits(1, d):
                TQ = d
                break
        if TQ == 0:                                    # last resort: pad Lq
            TQ = max(8, min(_round_up(Lq, 8), _round_up(tq_cap, 8)))
            while TQ > 8 and not fits(1, TQ):
                TQ -= 8
    Lq_pad = _round_up(Lq, TQ)

    # v7x has two TensorCores: give the second one a tile when B == 1.
    if (B == 1 and Lq_pad // TQ == 1 and TQ % 16 == 0
            and phys_vmem < 96 * 1024 * 1024):
        TQ //= 2
    n_q_tiles = Lq_pad // TQ

    # --- TB fusion only once TQ is MXU-wide; keep the grid at >= 2 steps ------
    TB = 1
    if TQ >= min(Lq_pad, 256):
        tb_limit = min(B, tb_cap)
        if n_q_tiles == 1 and B > 1:
            tb_limit = min(tb_limit, max(1, B // 2))
        for cand in range(tb_limit, 0, -1):
            if B % cand == 0 and fits(cand, TQ):
                TB = cand
                break
    grid = (B // TB, n_q_tiles)

    # --- wrapper-side padding (skipped entirely when already aligned) ---------
    q_in = query
    if Lq_pad != Lq or Dp != D:
        q_in = jnp.pad(query, ((0, 0), (0, Lq_pad - Lq), (0, Dp - D)))
    c_in = context
    if Lkp != Lk or Dp != D:
        c_in = jnp.pad(context, ((0, 0), (0, Lkp - Lk), (0, Dp - D)))
    w_in_p = w_in
    if Dp != D:
        w_in_p = jnp.pad(w_in, ((0, Dp - D), (0, Dp - D)))
    w_out_mix = w_out[:D]
    w_out_q = w_out[D:]
    if Dp != D:
        w_out_mix = jnp.pad(w_out_mix, ((0, Dp - D), (0, Dp - D)))
        w_out_q = jnp.pad(w_out_q, ((0, Dp - D), (0, Dp - D)))

    kernel = functools.partial(_attention_kernel,
                               n_keys=Lk, mask_keys=(Lkp != Lk))

    def _make_call(single_buffer_weights):
        def w_spec():
            if single_buffer_weights:
                try:
                    # Constant block index -> DMA'd once; don't double-buffer.
                    return pl.BlockSpec((Dp, Dp), lambda b, qi: (0, 0),
                                        pipeline_mode=pl.Buffered(1))
                except Exception:
                    pass
            return pl.BlockSpec((Dp, Dp), lambda b, qi: (0, 0))

        grid_spec = pltpu.PrefetchScalarGridSpec(
            num_scalar_prefetch=0,
            grid=grid,
            in_specs=[
                pl.BlockSpec((TB, TQ, Dp), lambda b, qi: (b, qi, 0)),
                pl.BlockSpec((TB, Lkp, Dp), lambda b, qi: (b, 0, 0)),
                w_spec(),
                w_spec(),
                w_spec(),
            ],
            out_specs=[
                pl.BlockSpec((TB, TQ, Dp), lambda b, qi: (b, qi, 0)),
                pl.BlockSpec((TB, TQ, Lkp), lambda b, qi: (b, qi, 0)),
            ],
        )
        return pl.pallas_call(
            kernel,
            out_shape=(
                jax.ShapeDtypeStruct((B, Lq_pad, Dp), query.dtype),
                jax.ShapeDtypeStruct((B, Lq_pad, Lkp), wts_dtype),
            ),
            grid_spec=grid_spec,
            compiler_params=pltpu.CompilerParams(
                dimension_semantics=("parallel", "parallel"),
                vmem_limit_bytes=vmem_limit,
            ),
        )

    args = (q_in, c_in, w_in_p, w_out_mix, w_out_q)
    try:
        out, wts = _make_call(True)(*args)
    except Exception:
        # Fallback if this JAX build rejects pl.Buffered(1) on pallas_call specs.
        out, wts = _make_call(False)(*args)

    if Lq_pad != Lq or Dp != D:
        out = out[:, :Lq, :D]
    if Lq_pad != Lq or Lkp != Lk:
        wts = wts[:, :Lq, :Lk]
    return out, wts


# ---------------------------------------------------------------------------
# Pure-JAX reference (mirrors the PyTorch forward, attention_type='general')
# ---------------------------------------------------------------------------
def attention_reference(query, context, w_in, w_out):
    qg = jnp.einsum("bld,de->ble", query, w_in)
    scores = jnp.einsum("bld,bkd->blk", qg, context)
    weights = jax.nn.softmax(scores, axis=-1)
    mix = jnp.einsum("blk,bkd->bld", weights, context)
    combined = jnp.concatenate([mix, qg], axis=-1)
    output = jnp.tanh(jnp.einsum("blc,cd->bld", combined, w_out))
    return output, weights


def _run_case(key, B, Lq, Lk, D):
    k_q, k_c, k_win, k_wout = jax.random.split(key, 4)
    query = jax.random.normal(k_q, (B, Lq, D), dtype=jnp.float32)
    context = jax.random.normal(k_c, (B, Lk, D), dtype=jnp.float32)

    # Deterministic parameter init (Kaiming-uniform-like scale, as in nn.Linear).
    bound_in = 1.0 / (D ** 0.5)
    bound_out = 1.0 / ((2 * D) ** 0.5)
    # nn.Linear weight is (out, in) applied as x @ W^T; we pre-transpose to (in, out).
    w_in = jax.random.uniform(k_win, (D, D), jnp.float32, -bound_in, bound_in)
    w_out = jax.random.uniform(k_wout, (2 * D, D), jnp.float32, -bound_out, bound_out)

    out, wts = attention_forward(query, context, w_in, w_out)
    jax.block_until_ready((out, wts))

    out_ref, wts_ref = attention_reference(query, context, w_in, w_out)
    assert out.shape == (B, Lq, D) and wts.shape == (B, Lq, Lk)
    assert jnp.allclose(out, out_ref, atol=1e-5, rtol=1e-5), "output mismatch"
    assert jnp.allclose(wts, wts_ref, atol=1e-5, rtol=1e-5), "weights mismatch"


if __name__ == "__main__":
    key = jax.random.PRNGKey(0)
    k0, k1 = jax.random.split(key)
    # Exercises D padding (32 -> 128) and Lk padding / key masking (8 -> 128).
    _run_case(k0, B=2, Lq=8, Lk=8, D=32)
    # Exercises an unpadded full-Lq tile (TQ=20), batch fusion (TB=2) and
    # key masking (16 -> 128) with an already lane-aligned D.
    _run_case(k1, B=4, Lq=20, Lk=16, D=128)
    print("KERNEL_OK")
</pallas_src>

<mosaic_0001>
module attributes {stable_mosaic.version = 11 : i64} {
  func.func @_attention_kernel(%arg0: i32, %arg1: i32, %arg2: memref<1x8x128xf32, #tpu.memory_space<vmem>>, %arg3: memref<1x128x128xf32, #tpu.memory_space<vmem>>, %arg4: memref<128x128xf32, #tpu.memory_space<vmem>>, %arg5: memref<128x128xf32, #tpu.memory_space<vmem>>, %arg6: memref<128x128xf32, #tpu.memory_space<vmem>>, %arg7: memref<1x8x128xf32, #tpu.memory_space<vmem>>, %arg8: memref<1x8x128xf32, #tpu.memory_space<vmem>>) attributes {dimension_semantics = [#tpu.dimension_semantics<parallel>, #tpu.dimension_semantics<parallel>], iteration_bounds = array<i64: 2, 1>, scalar_prefetch = 0 : i64, scratch_operands = 0 : i64, tpu.core_type = #tpu.core_type<tc>, window_params = [{transform_indices = @transform_0, window_bounds = array<i64: 1, 8, 128>}, {transform_indices = @transform_1, window_bounds = array<i64: 1, 128, 128>}, {pipeline_mode = #tpu.pipeline_mode<synchronous>, transform_indices = @transform_2, window_bounds = array<i64: 128, 128>}, {pipeline_mode = #tpu.pipeline_mode<synchronous>, transform_indices = @transform_3, window_bounds = array<i64: 128, 128>}, {pipeline_mode = #tpu.pipeline_mode<synchronous>, transform_indices = @transform_4, window_bounds = array<i64: 128, 128>}, {transform_indices = @transform_5, window_bounds = array<i64: 1, 8, 128>}, {transform_indices = @transform_6, window_bounds = array<i64: 1, 8, 128>}]} {
    %c0 = arith.constant 0 : index
    %c0_0 = arith.constant 0 : index
    %0 = vector.load %arg4[%c0, %c0_0] : memref<128x128xf32, #tpu.memory_space<vmem>>, vector<128x128xf32>
    %c0_1 = arith.constant 0 : index
    %c0_2 = arith.constant 0 : index
    %1 = vector.load %arg5[%c0_1, %c0_2] : memref<128x128xf32, #tpu.memory_space<vmem>>, vector<128x128xf32>
    %c0_3 = arith.constant 0 : index
    %c0_4 = arith.constant 0 : index
    %2 = vector.load %arg6[%c0_3, %c0_4] : memref<128x128xf32, #tpu.memory_space<vmem>>, vector<128x128xf32>
    %c0_5 = arith.constant 0 : index
    %c0_6 = arith.constant 0 : index
    %c0_7 = arith.constant 0 : index
    %3 = vector.load %arg2[%c0_5, %c0_6, %c0_7] : memref<1x8x128xf32, #tpu.memory_space<vmem>>, vector<1x8x128xf32>
    %4 = vector.shape_cast %3 : vector<1x8x128xf32> to vector<8x128xf32>
    %c0_8 = arith.constant 0 : index
    %c0_9 = arith.constant 0 : index
    %c0_10 = arith.constant 0 : index
    %5 = vector.load %arg3[%c0_8, %c0_9, %c0_10] : memref<1x128x128xf32, #tpu.memory_space<vmem>>, vector<1x128x128xf32>
    %6 = vector.shape_cast %5 : vector<1x128x128xf32> to vector<128x128xf32>
    %cst = arith.constant dense<0.000000e+00> : vector<8x128xf32>
    %7 = tpu.matmul %4, %0, %cst {dimension_numbers = #tpu.dot_dimension_numbers<[1], [0], [0], [1], [0, 0, 1, 1], [], []>} : vector<8x128xf32>, vector<128x128xf32>, vector<8x128xf32> -> vector<8x128xf32>
    %cst_11 = arith.constant dense<0.000000e+00> : vector<8x128xf32>
    %8 = tpu.matmul %7, %6, %cst_11 {dimension_numbers = #tpu.dot_dimension_numbers<[1], [1], [0], [0], [0, 0, 1, 0], [], []>} : vector<8x128xf32>, vector<128x128xf32>, vector<8x128xf32> -> vector<8x128xf32>
    %9 = tpu.iota {dimensions = array<i32: 1>} : vector<8x128xi32>
    %c8_i32 = arith.constant 8 : i32
    %10 = vector.broadcast %c8_i32 : i32 to vector<8x128xi32>
    %11 = arith.cmpi slt, %9, %10 : vector<8x128xi32>
    %cst_12 = arith.constant -1.000000e+30 : f32
    %12 = vector.broadcast %cst_12 : f32 to vector<8x128xf32>
    %13 = arith.select %11, %8, %12 : vector<8x128xi1>, vector<8x128xf32>
    %cst_13 = arith.constant dense<0xFF800000> : vector<8xf32>
    %14 = vector.multi_reduction <maximumf>, %13, %cst_13 [1] : vector<8x128xf32> to vector<8xf32>
    %15 = vector.shape_cast %14 : vector<8xf32> to vector<8x1xf32>
    %16 = vector.broadcast %15 : vector<8x1xf32> to vector<8x128xf32>
    %17 = arith.subf %13, %16 : vector<8x128xf32>
    %18 = math.exp %17 : vector<8x128xf32>
    %cst_14 = arith.constant dense<0.000000e+00> : vector<8xf32>
    %19 = vector.multi_reduction <add>, %18, %cst_14 [1] : vector<8x128xf32> to vector<8xf32>
    %20 = vector.shape_cast %19 : vector<8xf32> to vector<8x1xf32>
    %21 = tpu.reciprocal %20 {approx = true} : vector<8x1xf32> -> vector<8x1xf32>
    %22 = arith.mulf %20, %21 : vector<8x1xf32>
    %cst_15 = arith.constant 2.000000e+00 : f32
    %23 = vector.broadcast %cst_15 : f32 to vector<8x1xf32>
    %24 = arith.subf %23, %22 : vector<8x1xf32>
    %25 = arith.mulf %21, %24 : vector<8x1xf32>
    %26 = vector.broadcast %25 : vector<8x1xf32> to vector<8x128xf32>
    %27 = arith.mulf %18, %26 : vector<8x128xf32>
    %cst_16 = arith.constant dense<0.000000e+00> : vector<8x128xf32>
    %28 = tpu.matmul %27, %6, %cst_16 {dimension_numbers = #tpu.dot_dimension_numbers<[1], [0], [0], [1], [0, 0, 1, 1], [], []>} : vector<8x128xf32>, vector<128x128xf32>, vector<8x128xf32> -> vector<8x128xf32>
    %cst_17 = arith.constant dense<0.000000e+00> : vector<8x128xf32>
    %29 = tpu.matmul %28, %1, %cst_17 {dimension_numbers = #tpu.dot_dimension_numbers<[1], [0], [0], [1], [0, 0, 1, 1], [], []>} : vector<8x128xf32>, vector<128x128xf32>, vector<8x128xf32> -> vector<8x128xf32>
    %cst_18 = arith.constant dense<0.000000e+00> : vector<8x128xf32>
    %30 = tpu.matmul %7, %2, %cst_18 {dimension_numbers = #tpu.dot_dimension_numbers<[1], [0], [0], [1], [0, 0, 1, 1], [], []>} : vector<8x128xf32>, vector<128x128xf32>, vector<8x128xf32> -> vector<8x128xf32>
    %31 = arith.addf %29, %30 : vector<8x128xf32>
    %32 = math.tanh %31 : vector<8x128xf32>
    %c0_19 = arith.constant 0 : index
    %c0_20 = arith.constant 0 : index
    %c0_21 = arith.constant 0 : index
    %33 = vector.load %arg7[%c0_19, %c0_20, %c0_21] : memref<1x8x128xf32, #tpu.memory_space<vmem>>, vector<1x8x128xf32>
    %34 = vector.shape_cast %33 : vector<1x8x128xf32> to vector<8x128xf32>
    %35 = vector.shape_cast %32 : vector<8x128xf32> to vector<1x8x128xf32>
    tpu.vector_store %arg7[%c0_19, %c0_20, %c0_21], %35 {strides = array<i32>} : memref<1x8x128xf32, #tpu.memory_space<vmem>>, vector<1x8x128xf32>,
    %c0_22 = arith.constant 0 : index
    %c0_23 = arith.constant 0 : index
    %c0_24 = arith.constant 0 : index
    %36 = vector.load %arg8[%c0_22, %c0_23, %c0_24] : memref<1x8x128xf32, #tpu.memory_space<vmem>>, vector<1x8x128xf32>
    %37 = vector.shape_cast %36 : vector<1x8x128xf32> to vector<8x128xf32>
    %38 = vector.shape_cast %27 : vector<8x128xf32> to vector<1x8x128xf32>
    tpu.vector_store %arg8[%c0_22, %c0_23, %c0_24], %38 {strides = array<i32>} : memref<1x8x128xf32, #tpu.memory_space<vmem>>, vector<1x8x128xf32>,
    return
  }
  func.func @transform_0(%arg0: i32, %arg1: i32) -> (i32, i32, i32) {
    %c0_i32 = arith.constant 0 : i32
    %c0_i32_0 = arith.constant 0 : i32
    return %arg0, %arg1, %c0_i32 : i32, i32, i32
  }
  func.func @transform_1(%arg0: i32, %arg1: i32) -> (i32, i32, i32) {
    %c0_i32 = arith.constant 0 : i32
    %c0_i32_0 = arith.constant 0 : i32
    %c0_i32_1 = arith.constant 0 : i32
    return %arg0, %c0_i32, %c0_i32_0 : i32, i32, i32
  }
  func.func @transform_2(%arg0: i32, %arg1: i32) -> (i32, i32) {
    %c0_i32 = arith.constant 0 : i32
    %c0_i32_0 = arith.constant 0 : i32
    %c0_i32_1 = arith.constant 0 : i32
    return %c0_i32, %c0_i32_0 : i32, i32
  }
  func.func @transform_3(%arg0: i32, %arg1: i32) -> (i32, i32) {
    %c0_i32 = arith.constant 0 : i32
    %c0_i32_0 = arith.constant 0 : i32
    %c0_i32_1 = arith.constant 0 : i32
    return %c0_i32, %c0_i32_0 : i32, i32
  }
  func.func @transform_4(%arg0: i32, %arg1: i32) -> (i32, i32) {
    %c0_i32 = arith.constant 0 : i32
    %c0_i32_0 = arith.constant 0 : i32
    %c0_i32_1 = arith.constant 0 : i32
    return %c0_i32, %c0_i32_0 : i32, i32
  }
  func.func @transform_5(%arg0: i32, %arg1: i32) -> (i32, i32, i32) {
    %c0_i32 = arith.constant 0 : i32
    %c0_i32_0 = arith.constant 0 : i32
    return %arg0, %arg1, %c0_i32 : i32, i32, i32
  }
  func.func @transform_6(%arg0: i32, %arg1: i32) -> (i32, i32, i32) {
    %c0_i32 = arith.constant 0 : i32
    %c0_i32_0 = arith.constant 0 : i32
    return %arg0, %arg1, %c0_i32 : i32, i32, i32
  }
}

module attributes {stable_mosaic.version = 11 : i64} {
  func.func @_attention_kernel(%arg0: i32, %arg1: i32, %arg2: memref<1x8x128xf32, #tpu.memory_space<vmem>>, %arg3: memref<1x128x128xf32, #tpu.memory_space<vmem>>, %arg4: memref<128x128xf32, #tpu.memory_space<vmem>>, %arg5: memref<128x128xf32, #tpu.memory_space<vmem>>, %arg6: memref<128x128xf32, #tpu.memory_space<vmem>>, %arg7: memref<1x8x128xf32, #tpu.memory_space<vmem>>, %arg8: memref<1x8x128xf32, #tpu.memory_space<vmem>>) attributes {dimension_semantics = [#tpu.dimension_semantics<parallel>, #tpu.dimension_semantics<parallel>], iteration_bounds = array<i64: 2, 1>, scalar_prefetch = 0 : i64, scratch_operands = 0 : i64, tpu.core_type = #tpu.core_type<tc>, window_params = [{transform_indices = @transform_0, window_bounds = array<i64: 1, 8, 128>}, {transform_indices = @transform_1, window_bounds = array<i64: 1, 128, 128>}, {pipeline_mode = #tpu.pipeline_mode<synchronous>, transform_indices = @transform_2, window_bounds = array<i64: 128, 128>}, {pipeline_mode = #tpu.pipeline_mode<synchronous>, transform_indices = @transform_3, window_bounds = array<i64: 128, 128>}, {pipeline_mode = #tpu.pipeline_mode<synchronous>, transform_indices = @transform_4, window_bounds = array<i64: 128, 128>}, {transform_indices = @transform_5, window_bounds = array<i64: 1, 8, 128>}, {transform_indices = @transform_6, window_bounds = array<i64: 1, 8, 128>}]} {
    %c0 = arith.constant 0 : index
    %c0_0 = arith.constant 0 : index
    %0 = vector.load %arg4[%c0, %c0_0] : memref<128x128xf32, #tpu.memory_space<vmem>>, vector<128x128xf32>
    %c0_1 = arith.constant 0 : index
    %c0_2 = arith.constant 0 : index
    %1 = vector.load %arg5[%c0_1, %c0_2] : memref<128x128xf32, #tpu.memory_space<vmem>>, vector<128x128xf32>
    %c0_3 = arith.constant 0 : index
    %c0_4 = arith.constant 0 : index
    %2 = vector.load %arg6[%c0_3, %c0_4] : memref<128x128xf32, #tpu.memory_space<vmem>>, vector<128x128xf32>
    %c0_5 = arith.constant 0 : index
    %c0_6 = arith.constant 0 : index
    %c0_7 = arith.constant 0 : index
    %3 = vector.load %arg2[%c0_5, %c0_6, %c0_7] : memref<1x8x128xf32, #tpu.memory_space<vmem>>, vector<1x8x128xf32>
    %4 = vector.shape_cast %3 : vector<1x8x128xf32> to vector<8x128xf32>
    %c0_8 = arith.constant 0 : index
    %c0_9 = arith.constant 0 : index
    %c0_10 = arith.constant 0 : index
    %5 = vector.load %arg3[%c0_8, %c0_9, %c0_10] : memref<1x128x128xf32, #tpu.memory_space<vmem>>, vector<1x128x128xf32>
    %6 = vector.shape_cast %5 : vector<1x128x128xf32> to vector<128x128xf32>
    %cst = arith.constant dense<0.000000e+00> : vector<8x128xf32>
    %7 = tpu.matmul %4, %0, %cst {dimension_numbers = #tpu.dot_dimension_numbers<[1], [0], [0], [1], [0, 0, 1, 1], [], []>} : vector<8x128xf32>, vector<128x128xf32>, vector<8x128xf32> -> vector<8x128xf32>
    %cst_11 = arith.constant dense<0.000000e+00> : vector<8x128xf32>
    %8 = tpu.matmul %7, %6, %cst_11 {dimension_numbers = #tpu.dot_dimension_numbers<[1], [1], [0], [0], [0, 0, 1, 0], [], []>} : vector<8x128xf32>, vector<128x128xf32>, vector<8x128xf32> -> vector<8x128xf32>
    %9 = tpu.iota {dimensions = array<i32: 1>} : vector<8x128xi32>
    %c8_i32 = arith.constant 8 : i32
    %10 = vector.broadcast %c8_i32 : i32 to vector<8x128xi32>
    %11 = arith.cmpi slt, %9, %10 : vector<8x128xi32>
    %cst_12 = arith.constant -1.000000e+30 : f32
    %12 = vector.broadcast %cst_12 : f32 to vector<8x128xf32>
    %13 = arith.select %11, %8, %12 : vector<8x128xi1>, vector<8x128xf32>
    %cst_13 = arith.constant dense<0xFF800000> : vector<8xf32>
    %14 = vector.multi_reduction <maximumf>, %13, %cst_13 [1] : vector<8x128xf32> to vector<8xf32>
    %15 = vector.shape_cast %14 : vector<8xf32> to vector<8x1xf32>
    %16 = vector.broadcast %15 : vector<8x1xf32> to vector<8x128xf32>
    %17 = arith.subf %13, %16 : vector<8x128xf32>
    %18 = math.exp %17 : vector<8x128xf32>
    %cst_14 = arith.constant dense<0.000000e+00> : vector<8xf32>
    %19 = vector.multi_reduction <add>, %18, %cst_14 [1] : vector<8x128xf32> to vector<8xf32>
    %20 = vector.shape_cast %19 : vector<8xf32> to vector<8x1xf32>
    %21 = tpu.reciprocal %20 {approx = true} : vector<8x1xf32> -> vector<8x1xf32>
    %22 = arith.mulf %20, %21 : vector<8x1xf32>
    %cst_15 = arith.constant 2.000000e+00 : f32
    %23 = vector.broadcast %cst_15 : f32 to vector<8x1xf32>
    %24 = arith.subf %23, %22 : vector<8x1xf32>
    %25 = arith.mulf %21, %24 : vector<8x1xf32>
    %26 = vector.broadcast %25 : vector<8x1xf32> to vector<8x128xf32>
    %27 = arith.mulf %18, %26 : vector<8x128xf32>
    %cst_16 = arith.constant dense<0.000000e+00> : vector<8x128xf32>
    %28 = tpu.matmul %27, %6, %cst_16 {dimension_numbers = #tpu.dot_dimension_numbers<[1], [0], [0], [1], [0, 0, 1, 1], [], []>} : vector<8x128xf32>, vector<128x128xf32>, vector<8x128xf32> -> vector<8x128xf32>
    %cst_17 = arith.constant dense<0.000000e+00> : vector<8x128xf32>
    %29 = tpu.matmul %28, %1, %cst_17 {dimension_numbers = #tpu.dot_dimension_numbers<[1], [0], [0], [1], [0, 0, 1, 1], [], []>} : vector<8x128xf32>, vector<128x128xf32>, vector<8x128xf32> -> vector<8x128xf32>
    %cst_18 = arith.constant dense<0.000000e+00> : vector<8x128xf32>
    %30 = tpu.matmul %7, %2, %cst_18 {dimension_numbers = #tpu.dot_dimension_numbers<[1], [0], [0], [1], [0, 0, 1, 1], [], []>} : vector<8x128xf32>, vector<128x128xf32>, vector<8x128xf32> -> vector<8x128xf32>
    %31 = arith.addf %29, %30 : vector<8x128xf32>
    %32 = math.tanh %31 : vector<8x128xf32>
    %c0_19 = arith.constant 0 : index
    %c0_20 = arith.constant 0 : index
    %c0_21 = arith.constant 0 : index
    %33 = vector.load %arg7[%c0_19, %c0_20, %c0_21] : memref<1x8x128xf32, #tpu.memory_space<vmem>>, vector<1x8x128xf32>
    %34 = vector.shape_cast %33 : vector<1x8x128xf32> to vector<8x128xf32>
    %35 = vector.shape_cast %32 : vector<8x128xf32> to vector<1x8x128xf32>
    tpu.vector_store %arg7[%c0_19, %c0_20, %c0_21], %35 {strides = array<i32>} : memref<1x8x128xf32, #tpu.memory_space<vmem>>, vector<1x8x128xf32>,
    %c0_22 = arith.constant 0 : index
    %c0_23 = arith.constant 0 : index
    %c0_24 = arith.constant 0 : index
    %36 = vector.load %arg8[%c0_22, %c0_23, %c0_24] : memref<1x8x128xf32, #tpu.memory_space<vmem>>, vector<1x8x128xf32>
    %37 = vector.shape_cast %36 : vector<1x8x128xf32> to vector<8x128xf32>
    %38 = vector.shape_cast %27 : vector<8x128xf32> to vector<1x8x128xf32>
    tpu.vector_store %arg8[%c0_22, %c0_23, %c0_24], %38 {strides = array<i32>} : memref<1x8x128xf32, #tpu.memory_space<vmem>>, vector<1x8x128xf32>,
    return
  }
  func.func @transform_0(%arg0: i32, %arg1: i32) -> (i32, i32, i32) {
    %c0_i32 = arith.constant 0 : i32
    %c0_i32_0 = arith.constant 0 : i32
    return %arg0, %arg1, %c0_i32 : i32, i32, i32
  }
  func.func @transform_1(%arg0: i32, %arg1: i32) -> (i32, i32, i32) {
    %c0_i32 = arith.constant 0 : i32
    %c0_i32_0 = arith.constant 0 : i32
    %c0_i32_1 = arith.constant 0 : i32
    return %arg0, %c0_i32, %c0_i32_0 : i32, i32, i32
  }
  func.func @transform_2(%arg0: i32, %arg1: i32) -> (i32, i32) {
    %c0_i32 = arith.constant 0 : i32
    %c0_i32_0 = arith.constant 0 : i32
    %c0_i32_1 = arith.constant 0 : i32
    return %c0_i32, %c0_i32_0 : i32, i32
  }
  func.func @transform_3(%arg0: i32, %arg1: i32) -> (i32, i32) {
    %c0_i32 = arith.constant 0 : i32
    %c0_i32_0 = arith.constant 0 : i32
    %c0_i32_1 = arith.constant 0 : i32
    return %c0_i32, %c0_i32_0 : i32, i32
  }
  func.func @transform_4(%arg0: i32, %arg1: i32) -> (i32, i32) {
    %c0_i32 = arith.constant 0 : i32
    %c0_i32_0 = arith.constant 0 : i32
    %c0_i32_1 = arith.constant 0 : i32
    return %c0_i32, %c0_i32_0 : i32, i32
  }
  func.func @transform_5(%arg0: i32, %arg1: i32) -> (i32, i32, i32) {
    %c0_i32 = arith.constant 0 : i32
    %c0_i32_0 = arith.constant 0 : i32
    return %arg0, %arg1, %c0_i32 : i32, i32, i32
  }
  func.func @transform_6(%arg0: i32, %arg1: i32) -> (i32, i32, i32) {
    %c0_i32 = arith.constant 0 : i32
    %c0_i32_0 = arith.constant 0 : i32
    return %arg0, %arg1, %c0_i32 : i32, i32, i32
  }
}

</mosaic_0001>

<bundles_post_ra>
// kernel: tpu_custom_call.1
= control target key start
LH: loop header
LB: loop body
LE: loop exit
PB: predicated region body
PF: predicated region fallthrough
CT: control target
= control target key end

     0   :  { %s2301_s0 = inlined_call_operand.hbm [shape: f32[2,8,128], index: 0, kind: input, shape index: {}]   ;;  %s2302_s1 = inlined_call_operand.hbm [shape: f32[2,128,128], index: 1, kind: input, shape index: {}]   ;;  %s2303_s2 = inlined_call_operand.hbm [shape: f32[128,128], index: 2, kind: input, shape index: {}]   ;;  %s2304_s3 = inlined_call_operand.hbm [shape: f32[128,128], index: 3, kind: input, shape index: {}]   ;;  %s2305_s4 = inlined_call_operand.hbm [shape: f32[128,128], index: 4, kind: input, shape index: {}]   ;;  %s2306_s5 = inlined_call_operand.hbm [shape: f32[2,8,128], index: 5, kind: output, shape index: {0}]   ;;  %s2307_s6 = inlined_call_operand.hbm [shape: f32[2,8,128], index: 6, kind: output, shape index: {1}]  }
   0x1   :  { %2315 = sst [smem:[#allocation22_spill]] %s2301_s0 }
   0x2   :  { %2316 = sst [smem:[#allocation23_spill]] %s2303_s2 }
   0x3   :  { %12 = vsyncpa [#allocation3], 0 }
   0x4   :  { %14 = vsyncpa [#allocation3 + $0x1], 0 }
   0x5   :  { %15 = vsyncpa [#allocation6], 0 }
   0x6   :  { %17 = vsyncpa [#allocation6 + $0x1], 0 }
   0x7   :  { %18 = vsyncpa [#allocation9], 0 }
   0x8   :  { %19 = vsyncpa [#allocation4], 0 }
   0x9   :  { %21 = vsyncpa [#allocation4 + $0x1], 0 }
   0xa   :  { %22 = vsyncpa [#allocation13], 0 }
   0xb   :  { %24 = vsyncpa [#allocation13 + $0x1], 0  ;;  %s1854_s21 = smov 0   ;;  %s1856_s22 = smov 0  }
   0xc   :  { %s1858_s23 = smov 0   ;;  %s1860_s24 = smov 0  }
   0xd   :  { %s1862_s25 = smov 0   ;;  %s1864_s26 = smov 0  }
   0xe LB: > { %2317 = sst [smem:[#allocation20_spill]] %s1785_s21  ;;  %s1885_s27 = sadd.s32 4294967295, %s1805_s26   ;;  %s1805_s26 = sphi %s1864_s26, %s30_s26   ;;  %s1801_s25 = sphi %s1862_s25, %s2346_s25   ;;  %s1797_s24 = sphi %s1860_s24, %s2345_s24   ;;  %s1793_s23 = sphi %s1858_s23, %s2344_s23   ;;  %s1789_s22 = sphi %s1856_s22, %s2343_s22   ;;  %s1785_s21 = sphi %s1854_s21, %s2342_s21  }
   0xf   : > { %s1013_s28 = sadd.s32 4294967294, %s1805_s26   ;;  %p64_p0 = scmp.ne.s32.totalorder %s1789_s22, %s1785_s21 }
  0x10   : > { %p2308_p1 = scmp.eq.s32.totalorder %s1885_s27, 0  ;;  %p185_p3 = scmp.eq.s32.totalorder %s1013_s28, 1 }
  0x11   : > { %p1014_p5 = scmp.ge.s32.totalorder %s1805_s26, 1  ;;  %p220_p7 = scmp.lt.s32.totalorder %s1805_s26, 3 }
  0x12   : > { %p1894_p4 = por %p2308_p1, %p64_p0  ;;  %p1899_p6 = por %p185_p3, %p64_p0 }
  0x13   : > { %p1904_p8 = pnand %p1014_p5, %p220_p7  ;;  %s1807_s8 = smov [#allocation7]  }
  0x14   : > { %s2318_s29 = scalar_select %p1894_p4, 1, 0 }
  0x15   : > { %s2319_s30 = scalar_select %p1899_p6, 1, 0 }
  0x16   : > { %s2321_s7 = scalar_select %p1904_p8, 1, 0 }
  0x17   : > { %2320 = sst [smem:[#allocation21_spill]] %s2319_s30  ;;  %s232_s9 = sshll.u32 %s1807_s8, 4  ;;  %s1908_s9 = int_to_ptr.vmem [resolvable:$true] %s232_s9 }
  0x18   : > { %p1441_p9 = pneg %p1904_p8  ;;  %s1808_s11 = smov [#allocation8]  }
  0x19   : > { %s245_s12 = sshll.u32 %s1808_s11, 4  ;;  %s1809_s13 = smov [#allocation10]   ;;  %s1919_s12 = int_to_ptr.vmem [resolvable:$true] %s245_s12 }
  0x1a   : > { %p1915_p11 = pnand %p1441_p9, %p2308_p1  ;;  %s1921_s14 = sshll.u32 %s1809_s13, 4  ;;  %s259_s14 = int_to_ptr.vmem [resolvable:$true] %s1921_s14 }
  0x1b   : > { %s2323_s2 = sld [smem:[#allocation23_spill]] }
  0x1c   : > { %p1931_p13 = pneg %p1915_p11 }
  0x21   : > { %s1535_s17 = scalar_lea.hbm %s2323_s2, 2048 }
  0x22   : > { %p1536_p12 = scmp.ne.s32.totalorder %s2323_s2, %s1535_s17  ;;  %p1542_p5 = scmp.lt.u32.totalorder %s1535_s17, %s2323_s2 }
  0x24   : > { %p1538_p0 = pnand %p1931_p13, %p1536_p12 }
  0x26   : > { %p1539_p3 = pneg %p1538_p0 }
  0x28   : > { %p1544_p7 = pnand %p1542_p5, %p1539_p3 }
  0x2a   : > { %1547 = shalt.err (!%p1544_p7)
}
  0x2b   : > { %s1548_s11 = scalar_lea.vmem %s1908_s9, 2048  ;;  %p1556_p2 = scmp.lt.s32.totalorder %s1908_s9, %s1908_s9 }
  0x2c   : > { %p1549_p9 = scmp.ne.s32.totalorder %s1908_s9, %s1548_s11  ;;  %p1557_p6 = scmp.lt.s32.totalorder %s1548_s11, %s1548_s11 }
  0x2e   : > { %p1551_p10 = pnand %p1549_p9, %p1931_p13  ;;  %p1558_p12 = por %p1557_p6, %p1556_p2 }
  0x30   : > { %p1552_p1 = pneg %p1551_p10 }
  0x32   : > { %p1559_p0 = pnand %p1558_p12, %p1552_p1 }
  0x34   : > { %1562 = shalt.err (!%p1559_p0)
}
  0x35   : > { %s2313_s13 = smov 128   ;;  %s2314_s15 = smov 8  }
  0x36   : > { %1444 = dma.hbm_to_vmem [thread:$0]  (!%p1915_p11), %s2323_s2, 2048, %s1908_s9, [#allocation6], %s2313_s13, %s2313_s13, %s2314_s15  }
  0x37   : > { %s1563_s28 = scalar_lea.hbm %s2304_s3, 2048 }
  0x38   : > { %p1564_p1 = scmp.ne.s32.totalorder %s2304_s3, %s1563_s28  ;;  %p1570_p10 = scmp.lt.u32.totalorder %s1563_s28, %s2304_s3 }
  0x3a   : > { %p1566_p2 = pnand %p1564_p1, %p1931_p13 }
  0x3c   : > { %p1567_p6 = pneg %p1566_p2 }
  0x3e   : > { %p1572_p3 = pnand %p1570_p10, %p1567_p6 }
  0x40   : > { %1575 = shalt.err (!%p1572_p3)
}
  0x41   : > { %s1576_s9 = scalar_lea.vmem %s1919_s12, 2048  ;;  %p1584_p12 = scmp.lt.s32.totalorder %s1919_s12, %s1919_s12 }
  0x42   : > { %p1577_p5 = scmp.ne.s32.totalorder %s1919_s12, %s1576_s9  ;;  %p1585_p0 = scmp.lt.s32.totalorder %s1576_s9, %s1576_s9 }
  0x44   : > { %p1579_p7 = pnand %p1577_p5, %p1931_p13  ;;  %p1586_p1 = por %p1585_p0, %p1584_p12 }
  0x46   : > { %p1580_p9 = pneg %p1579_p7 }
  0x48   : > { %p1587_p2 = pnand %p1586_p1, %p1580_p9 }
  0x4a   : > { %1590 = shalt.err (!%p1587_p2)
}
  0x4b   : > { %1447 = dma.hbm_to_vmem [thread:$0]  (!%p1915_p11), %s2304_s3, 2048, %s1919_s12, [#allocation9], %s2313_s13, %s2313_s13, %s2314_s15  }
  0x4c   : > { %s1591_s18 = scalar_lea.hbm %s2305_s4, 2048 }
  0x4d   : > { %p1592_p6 = scmp.ne.s32.totalorder %s2305_s4, %s1591_s18  ;;  %p1598_p5 = scmp.lt.u32.totalorder %s1591_s18, %s2305_s4 }
  0x4f   : > { %p1594_p10 = pnand %p1592_p6, %p1931_p13 }
  0x51   : > { %p1595_p3 = pneg %p1594_p10 }
  0x53   : > { %p1600_p7 = pnand %p1598_p5, %p1595_p3 }
  0x55   : > { %1603 = shalt.err (!%p1600_p7)
}
  0x56   : > { %s1604_s9 = scalar_lea.vmem %s259_s14, 2048  ;;  %p1612_p1 = scmp.lt.s32.totalorder %s259_s14, %s259_s14 }
  0x57   : > { %p1605_p9 = scmp.ne.s32.totalorder %s259_s14, %s1604_s9  ;;  %p1613_p2 = scmp.lt.s32.totalorder %s1604_s9, %s1604_s9 }
  0x59   : > { %p1607_p12 = pnand %p1605_p9, %p1931_p13  ;;  %p1614_p4 = por %p1613_p2, %p1612_p1 }
  0x5b   : > { %p1608_p0 = pneg %p1607_p12 }
  0x5d   : > { %p1615_p8 = pnand %p1614_p4, %p1608_p0 }
  0x5f   : > { %1618 = shalt.err (!%p1615_p8)
}
  0x60   : > { %1450 = dma.hbm_to_vmem [thread:$0]  (!%p1915_p11), %s2305_s4, 2048, %s259_s14, [#allocation9], %s2313_s13, %s2313_s13, %s2314_s15  }
  0x61   : > { %s51_s20 = sadd.s32 1, %s1793_s23  ;;  %s42_s10 = sadd.s32 1, %s1801_s25 }
  0x62   : > { %p58_p4 = scmp.ne.s32.totalorder %s1793_s23, %s1789_s22  ;;  %p44_p8 = scmp.ge.s32.totalorder %s42_s10, 2 }
  0x63   : > { %p59_p13 = scmp.eq.s32.totalorder %s1805_s26, 0  ;;  %p2325_p6 = scmp.eq.s32.totalorder %s1885_s27, 1 }
  0x64   : > { %p1468_p3 = scmp.lt.s32.totalorder %s1805_s26, 2  ;;  %s2348_s10 = smov (%p44_p8, %s42_s10), 0 }
  0x65   : > { %p2010_p10 = por %p2325_p6, %p58_p4  ;;  %p60_p5 = por %p59_p13, %p58_p4 }
  0x66   : > { %s2018_s16 = sand.u32 1, %s1793_s23   ;;  %s46_s14 = ssub.s32 %s1801_s25, %s2348_s10 }
  0x67   : > { %p49_p11 = scmp.eq.s32.totalorder %s46_s14, 0  ;;  %s1019_s17 = sshll.u32 %s2018_s16, 3 }
  0x68   : > { %s1020_s18 = sshll.u32 %s1801_s25, 7  ;;  %s2327_s0 = sld [smem:[#allocation22_spill]] }
  0x69   : > { %s2025_s19 = scalar_select %p49_p11, %s1793_s23, %s51_s20  }
  0x6a   : > { %s276_s9 = scalar_lea.vmem [#allocation2], %s1019_s17  ;;  %p2036_p7 = pnand %p1468_p3, %p60_p5 }
  0x6b   : > { %s284_s12 = sshll.u32 %s276_s9, 4  ;;  %s1021_s20 = sshll.u32 %s2018_s16, 7  ;;  %s2032_s12 = int_to_ptr.vmem [resolvable:$true] %s284_s12 }
  0x6c   : > { %s273_s28 = scalar_lea.sflag [#allocation3], %s2018_s16  ;;  %p1621_p12 = pneg %p2036_p7 }
  0x6e   : > { %s2030_s11 = scalar_lea.hbm %s2327_s0, %s1020_s18  ;;  %s1624_s9 = scalar_lea.hbm %s2327_s0, 256 }
  0x6f   : > { %s1619_s18 = scalar_lea.hbm %s2030_s11, 128  ;;  %p1625_p2 = scmp.lt.u32.totalorder %s2030_s11, %s2327_s0 }
  0x70   : > { %p1620_p9 = scmp.ne.s32.totalorder %s2030_s11, %s1619_s18  ;;  %p1626_p4 = scmp.lt.u32.totalorder %s1624_s9, %s1619_s18 }
  0x71   : > { %p1628_p13 = scmp.lt.u32.totalorder %s1619_s18, %s2030_s11 }
  0x72   : > { %p1622_p0 = pnand %p1621_p12, %p1620_p9  ;;  %p1627_p8 = por %p1626_p4, %p1625_p2 }
  0x74   : > { %p1623_p1 = pneg %p1622_p0  ;;  %p1629_p6 = por %p1628_p13, %p1627_p8 }
  0x76   : > { %p1630_p3 = pnand %p1629_p6, %p1623_p1 }
  0x78   : > { %1633 = shalt.err (!%p1630_p3)
}
  0x79   : > { %s1634_s14 = scalar_lea.vmem %s2032_s12, 128  ;;  %s1812_s17 = smov [#allocation2]  }
  0x7a   : > { %p1635_p5 = scmp.ne.s32.totalorder %s2032_s12, %s1634_s14  ;;  %s1639_s8 = sshll.u32 %s1812_s17, 4  ;;  %s1640_s8 = int_to_ptr.vmem [resolvable:$false] %s1639_s8 }
  0x7b   : > { %s1641_s13 = scalar_lea.vmem %s1640_s8, 256  ;;  %p1642_p0 = scmp.lt.s32.totalorder %s2032_s12, %s1640_s8 }
  0x7c   : > { %p1637_p11 = pnand %p1635_p5, %p1621_p12  ;;  %p1643_p2 = scmp.lt.s32.totalorder %s1641_s13, %s1634_s14 }
  0x7e   : > { %p1638_p9 = pneg %p1637_p11  ;;  %p1644_p4 = por %p1643_p2, %p1642_p0 }
  0x80   : > { %p1645_p8 = pnand %p1644_p4, %p1638_p9 }
  0x82   : > { %1648 = shalt.err (!%p1645_p8)
}
  0x83   : > { %1454 = dma.hbm_to_vmem [thread:$0]  (!%p2036_p7), %s2030_s11, 128, %s2032_s12, %s273_s28  }
  0x84   : > { %s295_s15 = scalar_lea.vmem [#allocation5], %s1021_s20  ;;  %s291_s9 = sand.u32 1, %s1805_s26  }
  0x85   : > { %s302_s18 = sshll.u32 %s295_s15, 4  ;;  %s2329_s17 = sshll.u32 %s1801_s25, 11  ;;  %s2071_s18 = int_to_ptr.vmem [resolvable:$true] %s302_s18 }
  0x86   : > { %s2078_s13 = scalar_lea.hbm %s2302_s1, %s2329_s17  ;;  %s2080_s0 = scalar_lea.sflag [#allocation6], %s291_s9 }
  0x87   : > { %s1649_s2 = scalar_lea.hbm %s2078_s13, 2048  ;;  %s1654_s12 = scalar_lea.hbm %s2302_s1, 4096 }
  0x88   : > { %p1650_p1 = scmp.ne.s32.totalorder %s2078_s13, %s1649_s2  ;;  %p1655_p3 = scmp.lt.u32.totalorder %s2078_s13, %s2302_s1 }
  0x89   : > { %p1656_p5 = scmp.lt.u32.totalorder %s1654_s12, %s1649_s2  ;;  %p1658_p9 = scmp.lt.u32.totalorder %s1649_s2, %s2078_s13 }
  0x8a   : > { %p1652_p13 = pnand %p1650_p1, %p1621_p12 }
  0x8b   : > { %p1657_p11 = por %p1656_p5, %p1655_p3 }
  0x8c   : > { %p1653_p6 = pneg %p1652_p13 }
  0x8d   : > { %p1659_p0 = por %p1658_p9, %p1657_p11 }
  0x8f   : > { %p1660_p2 = pnand %p1659_p0, %p1653_p6 }
  0x91   : > { %1663 = shalt.err (!%p1660_p2)
}
  0x92   : > { %s1664_s15 = scalar_lea.vmem %s2071_s18, 2048  ;;  %s1813_s9 = smov [#allocation5]  }
  0x93   : > { %p1665_p4 = scmp.ne.s32.totalorder %s2071_s18, %s1664_s15  ;;  %s1669_s17 = sshll.u32 %s1813_s9, 4  ;;  %s1670_s17 = int_to_ptr.vmem [resolvable:$false] %s1669_s17 }
  0x94   : > { %s1671_s14 = scalar_lea.vmem %s1670_s17, 4096  ;;  %p1672_p13 = scmp.lt.s32.totalorder %s2071_s18, %s1670_s17 }
  0x95   : > { %p1667_p8 = pnand %p1665_p4, %p1621_p12  ;;  %p1673_p3 = scmp.lt.s32.totalorder %s1671_s14, %s1664_s15 }
  0x97   : > { %p1668_p1 = pneg %p1667_p8  ;;  %p1674_p5 = por %p1673_p3, %p1672_p13 }
  0x99   : > { %p1675_p11 = pnand %p1674_p5, %p1668_p1 }
  0x9b   : > { %1678 = shalt.err (!%p1675_p11)
}
  0x9c   : > { %s2330_s2 = smov 8   ;;  %s2331_s8 = smov 128  }
  0x9d   : > { %1457 = dma.hbm_to_vmem [thread:$0]  (!%p2036_p7), %s2078_s13, 2048, %s2071_s18, %s2080_s0, %s2331_s8, %s2331_s8, %s2330_s2  }
  0x9e   : > { %p2332_p12 = scmp.ne.s32.totalorder %s2321_s7, 0 }
  0x9f   : > { %s2112_s16 = sand.u32 (!%p2332_p12), 1, %s1789_s22   ;;  %p2333_p6 = scmp.ne.s32.totalorder (!%p2332_p12), %s2318_s29, 0 }
  0xa0   : > { %314 = sbr.rel (%p2332_p12) target bundleno = 1403 (0x57b), region = 40  ;;  %s2115_s11 = sshll.u32 (!%p2332_p12), %s2112_s16, 3 }
  0xa1   : > { %s317_s21 = scalar_lea.sflag (!%p2332_p12), [#allocation3], %s2112_s16  ;;  %s320_s12 = scalar_lea.vmem (!%p2332_p12), [#allocation2], %s2115_s11 }
  0xa7   : > { %1760 = dma.done.wait (%p2333_p6), %s317_s21, 128  }
  0xa8   : > { %1762 = vsyncadd (%p2333_p6), %s317_s21, 4294967168  ;;  %s325_s0 = sand.u32 1, %s1885_s27   ;;  %s1026_s7 = sshll.u32 %s2112_s16, 7 }
  0xa9   : > { %s326_s18 = scalar_lea.sflag [#allocation6], %s325_s0  ;;  %s2125_s13 = scalar_lea.vmem [#allocation5], %s1026_s7 }
  0xaa   : > { %1764 = dma.done.wait (%p2333_p6), %s326_s18, 2048  }
  0xab   : > { %1766 = vsyncadd (%p2333_p6), %s326_s18, 4294965248  ;;  %p2334_p7 = scmp.eq.s32.totalorder %s1885_s27, 0 }
  0xad   : > { %1768 = dma.done.wait (%p2334_p7), [#allocation6], 2048   ;;  %p2335_p9 = pmov %p2334_p7 }
  0xae   : > { %p2336_p0 = pmov %p2334_p7 }
  0xaf   : > { %1770 = vsyncadd (%p2335_p9), [#allocation6], 4294965248 }
  0xb0   : > { %1772 = dma.done.wait (%p2336_p0), [#allocation9], 4096   ;;  %p2337_p2 = pmov %p2336_p0 }
  0xb1   : > { %v1814_v0 = vmov 0.0|0.0   ;;  %vm1815_vm0 = vmmov 0   ;;  %v1816_v1 = vmov 0.0   ;;  %v380_v2 = vld [vmem:[#allocation7] sm:$0xff]  ;;  %v381_v3 = vld [vmem:[#allocation7 + $0x8] sm:$0xff]  ;;  %v382_v4 = vld [vmem:[#allocation7 + $0x10] sm:$0xff]  ;;  %v585_v53 = vlaneseq }
  0xb2   : > { %1774 = vsyncadd (%p2337_p2), [#allocation9], 4294963200  ;;  %1299 = vmatprep.subr.bf16.mxu1 %v1814_v0  ;;  %1156 = vmatprep.mubr.msk.f32.mxu1 %vm1815_vm0, %v1816_v1  ;;  %v1300_v5 = vpack.c.bf16 %v381_v3, %v380_v2  ;;  %v383_v6 = vld [vmem:[#allocation7 + $0x18] sm:$0xff]  ;;  %v384_v8 = vld [vmem:[#allocation7 + $0x20] sm:$0xff]  ;;  %s379_s27 = scalar_lea.vmem [#allocation12], %s2115_s11  ;;  %s1034_s29 = sshll.u32 %s1797_s24, 7 }
  0xb3   : > { %1347 = vmatprep.subr.bf16.mxu0 %v1814_v0  ;;  %1226 = vmatprep.mubr.msk.f32.mxu0 %vm1815_vm0, %v1816_v1  ;;  %v1303_v7 = vpack.c.bf16 %v383_v6, %v382_v4  ;;  %v385_v9 = vld [vmem:[#allocation7 + $0x28] sm:$0xff]  ;;  %v429_v10 = vld [vmem:[%s2125_s13] sm:$0xff]  ;;  %v386_v13 = vld [vmem:[#allocation7 + $0x30] sm:$0xff]  ;;  %v586_v54 = vand.u32 127, %v585_v53  ;;  %s2224_s15 = scalar_lea.hbm %s2307_s6, %s1034_s29  ;;  %s848_s9 = sshll.u32 %s379_s27, 4  ;;  %s849_s9 = int_to_ptr.vmem [resolvable:$true] %s848_s9 }
  0xb4   : > { %1301 = vmatpush3.bf16.msra.mxu1 %v1300_v5  ;;  %v430_v11 = vld [vmem:[%s2125_s13 + $0x8] sm:$0xff]  ;;  %v1306_v12 = vpack.c.bf16 %v385_v9, %v384_v8  ;;  %v387_v15 = vld [vmem:[#allocation7 + $0x38] sm:$0xff]  ;;  %v431_v16 = vld [vmem:[%s2125_s13 + $0x10] sm:$0xff]  ;;  %s820_s17 = scalar_lea.sflag [#allocation13], %s2112_s16  ;;  %s1679_s14 = scalar_lea.vmem %s849_s9, 128 }
  0xb5   : > { %1302 = vmatprep.subr.bf16.mxu1 %v1814_v0  ;;  %v2148_v14 = vpack.c.bf16 %v430_v11, %v429_v10  ;;  %v432_v17 = vld [vmem:[%s2125_s13 + $0x18] sm:$0xff]  ;;  %v1309_v18 = vpack.c.bf16 %v387_v15, %v386_v13  ;;  %v388_v19 = vld [vmem:[#allocation7 + $0x40] sm:$0xff]  ;;  %v389_v21 = vld [vmem:[#allocation7 + $0x48] sm:$0xff]  ;;  %vm587_vm1 = vcmp.lt.s32.totalorder %v586_v54, 8  ;;  %p1680_p4 = scmp.ne.s32.totalorder %s849_s9, %s1679_s14  ;;  %s1817_s2 = smov [#allocation12]  }
  0xb6   : > { %v1327_v20 = vpack.c.bf16 %v432_v17, %v431_v16  ;;  %v433_v22 = vld [vmem:[%s2125_s13 + $0x20] sm:$0xff]  ;;  %v434_v23 = vld [vmem:[%s2125_s13 + $0x28] sm:$0xff]  ;;  %v1312_v24 = vpack.c.bf16 %v389_v21, %v388_v19  ;;  %v390_v25 = vld [vmem:[#allocation7 + $0x50] sm:$0xff]  ;;  %s1683_s8 = sshll.u32 %s1817_s2, 4  ;;  %s1684_s8 = int_to_ptr.vmem [resolvable:$false] %s1683_s8 }
  0xb7   : > { %1349 = vmatpush3.bf16.msra.mxu0 %v2148_v14  ;;  %v1330_v26 = vpack.c.bf16 %v434_v23, %v433_v22  ;;  %v391_v27 = vld [vmem:[#allocation7 + $0x58] sm:$0xff]  ;;  %v435_v28 = vld [vmem:[%s2125_s13 + $0x30] sm:$0xff]  ;;  %v392_v31 = vld [vmem:[#allocation7 + $0x60] sm:$0xff]  ;;  %p1681_p8 = pnand %p1680_p4, %p2010_p10  ;;  %s1685_s21 = scalar_lea.vmem %s1684_s8, 256 }
  0xb8   : > { %1304 = vmatpush3.bf16.msra.mxu1 %v1303_v7  ;;  %1350 = vmatprep.subr.bf16.mxu0 %v1814_v0  ;;  %v436_v29 = vld [vmem:[%s2125_s13 + $0x38] sm:$0xff]  ;;  %v1315_v30 = vpack.c.bf16 %v391_v27, %v390_v25  ;;  %v393_v33 = vld [vmem:[#allocation7 + $0x68] sm:$0xff]  ;;  %v437_v34 = vld [vmem:[%s2125_s13 + $0x40] sm:$0xff]  ;;  %p1686_p13 = scmp.lt.s32.totalorder %s849_s9, %s1684_s8  ;;  %p1687_p3 = scmp.lt.s32.totalorder %s1685_s21, %s1679_s14 }
  0xb9   : > { %1305 = vmatprep.subr.bf16.mxu1 %v1814_v0  ;;  %v1333_v32 = vpack.c.bf16 %v436_v29, %v435_v28  ;;  %v438_v35 = vld [vmem:[%s2125_s13 + $0x48] sm:$0xff]  ;;  %v1318_v36 = vpack.c.bf16 %v393_v33, %v392_v31  ;;  %v394_v37 = vld [vmem:[#allocation7 + $0x70] sm:$0xff]  ;;  %v395_v39 = vld [vmem:[#allocation7 + $0x78] sm:$0xff]  ;;  %p1682_p1 = pneg %p1681_p8 }
  0xba   : > { %v1336_v38 = vpack.c.bf16 %v438_v35, %v437_v34  ;;  %v439_v40 = vld [vmem:[%s2125_s13 + $0x50] sm:$0xff]  ;;  %v440_v41 = vld [vmem:[%s2125_s13 + $0x58] sm:$0xff]  ;;  %v1321_v42 = vpack.c.bf16 %v395_v39, %v394_v37  ;;  %v441_v44 = vld [vmem:[%s2125_s13 + $0x60] sm:$0xff]  ;;  %p1688_p5 = por %p1687_p3, %p1686_p13 }
  0xbb   : > { %1352 = vmatpush3.bf16.msra.mxu0 %v1327_v20  ;;  %v1339_v43 = vpack.c.bf16 %v440_v41, %v439_v40  ;;  %v442_v45 = vld [vmem:[%s2125_s13 + $0x68] sm:$0xff]  ;;  %v428_v46 = vld [vmem:[%s320_s12] sm:$0xff]  ;;  %v412_v4 = vld [vmem:[#allocation10] sm:$0xff] }
  0xbc   : > { %1307 = vmatpush3.bf16.msra.mxu1 %v1306_v12  ;;  %1353 = vmatprep.subr.bf16.mxu0 %v1814_v0  ;;  %v1342_v47 = vpack.c.bf16 %v442_v45, %v441_v44  ;;  %v443_v48 = vld [vmem:[%s2125_s13 + $0x70] sm:$0xff]  ;;  %v444_v49 = vld [vmem:[%s2125_s13 + $0x78] sm:$0xff]  ;;  %v413_v5 = vld [vmem:[#allocation10 + $0x8] sm:$0xff]  ;;  %p1689_p11 = pnand %p1688_p5, %p1682_p1 }
  0xbd   : > { %1308 = vmatprep.subr.bf16.mxu1 %v1814_v0  ;;  %v1345_v50 = vpack.c.bf16 %v444_v49, %v443_v48  ;;  %v1372_v7 = vpack.c.bf16 %v413_v5, %v412_v4  ;;  %v414_v9 = vld [vmem:[#allocation10 + $0x10] sm:$0xff]  ;;  %v415_v10 = vld [vmem:[#allocation10 + $0x18] sm:$0xff]  ;;  %v416_v12 = vld [vmem:[#allocation10 + $0x20] sm:$0xff] }
  0xbe   : > { %v1375_v11 = vpack.c.bf16 %v415_v10, %v414_v9  ;;  %v417_v13 = vld [vmem:[#allocation10 + $0x28] sm:$0xff]  ;;  %v418_v15 = vld [vmem:[#allocation10 + $0x30] sm:$0xff]  ;;  %v419_v16 = vld [vmem:[#allocation10 + $0x38] sm:$0xff] }
  0xbf   : > { %1355 = vmatpush3.bf16.msra.mxu0 %v1330_v26  ;;  %v1381_v17 = vpack.c.bf16 %v419_v16, %v418_v15  ;;  %v421_v19 = vld [vmem:[#allocation10 + $0x48] sm:$0xff]  ;;  %v422_v21 = vld [vmem:[#allocation10 + $0x50] sm:$0xff]  ;;  %v423_v22 = vld [vmem:[#allocation10 + $0x58] sm:$0xff] }
  0xc0   : > { %1310 = vmatpush3.bf16.msra.mxu1 %v1309_v18  ;;  %1356 = vmatprep.subr.bf16.mxu0 %v1814_v0  ;;  %v420_v18 = vld [vmem:[#allocation10 + $0x40] sm:$0xff]  ;;  %v1387_v23 = vpack.c.bf16 %v423_v22, %v422_v21  ;;  %v425_v25 = vld [vmem:[#allocation10 + $0x68] sm:$0xff]  ;;  %v426_v27 = vld [vmem:[#allocation10 + $0x70] sm:$0xff] }
  0xc1   : > { %1311 = vmatprep.subr.bf16.mxu1 %v1814_v0  ;;  %v427_v28 = vld [vmem:[#allocation10 + $0x78] sm:$0xff]  ;;  %v397_v31 = vld [vmem:[#allocation8 + $0x8] sm:$0xff]  ;;  %v398_v33 = vld [vmem:[#allocation8 + $0x10] sm:$0xff] }
  0xc2   : > { %v1393_v29 = vpack.c.bf16 %v427_v28, %v426_v27  ;;  %v399_v34 = vld [vmem:[#allocation8 + $0x18] sm:$0xff]  ;;  %v401_v37 = vld [vmem:[#allocation8 + $0x28] sm:$0xff]  ;;  %v402_v39 = vld [vmem:[#allocation8 + $0x30] sm:$0xff] }
  0xc3   : > { %1358 = vmatpush3.bf16.msra.mxu0 %v1333_v32  ;;  %v1399_v35 = vpack.c.bf16 %v399_v34, %v398_v33  ;;  %v403_v40 = vld [vmem:[#allocation8 + $0x38] sm:$0xff]  ;;  %v409_v48 = vld [vmem:[#allocation8 + $0x68] sm:$0xff] }
  0xc4   : > { %1313 = vmatpush3.bf16.msra.mxu1 %v1312_v24  ;;  %1359 = vmatprep.subr.bf16.mxu0 %v1814_v0  ;;  %v424_v24 = vld [vmem:[#allocation10 + $0x60] sm:$0xff]  ;;  %v1405_v41 = vpack.c.bf16 %v403_v40, %v402_v39  ;;  %v407_v45 = vld [vmem:[#allocation8 + $0x58] sm:$0xff] }
  0xc5   : > { %1314 = vmatprep.subr.bf16.mxu1 %v1814_v0 }
  0xc7   : > { %1361 = vmatpush3.bf16.msra.mxu0 %v1336_v38 }
  0xc8   : > { %1316 = vmatpush3.bf16.msra.mxu1 %v1315_v30  ;;  %1362 = vmatprep.subr.bf16.mxu0 %v1814_v0  ;;  %v396_v30 = vld [vmem:[#allocation8] sm:$0xff] }
  0xc9   : > { %1317 = vmatprep.subr.bf16.mxu1 %v1814_v0 }
  0xcb   : > { %1364 = vmatpush3.bf16.msra.mxu0 %v1339_v43 }
  0xcc   : > { %1319 = vmatpush3.bf16.msra.mxu1 %v1318_v36  ;;  %1365 = vmatprep.subr.bf16.mxu0 %v1814_v0  ;;  %v400_v36 = vld [vmem:[#allocation8 + $0x20] sm:$0xff] }
  0xcd   : > { %1320 = vmatprep.subr.bf16.mxu1 %v1814_v0 }
  0xcf   : > { %1367 = vmatpush3.bf16.msra.mxu0 %v1342_v47 }
  0xd0   : > { %1322 = vmatpush3.bf16.msra.mxu1 %v1321_v42  ;;  %1368 = vmatprep.subr.bf16.mxu0 %v1814_v0  ;;  %v404_v42 = vld [vmem:[#allocation8 + $0x40] sm:$0xff] }
  0xd1   : > { %1323 = vmatprep.subr.bf16.mxu1 %v1814_v0 }
  0xd3   : > { %1157 = vmatmul.mubr.f32.vlgmr.msra.gmra.mrb[0].mxu1 %v428_v46  ;;  %1370 = vmatpush3.bf16.msra.mxu0 %v1345_v50 }
  0xd4   : > { %1191 = vmatprep.mubr.msk.f32.mxu1 %vm1815_vm0, %v1816_v1  ;;  %1371 = vmatprep.subr.bf16.mxu0 %v1814_v0 }
  0xd9   : > { %1325 = vmatpush3.bf16.xpose.msra.mxu1 %v2148_v14  ;;  %v1378_v14 = vpack.c.bf16 %v417_v13, %v416_v12 }
  0xda   : > { %1326 = vmatprep.subr.bf16.mxu1 %v1814_v0 }
  0xe1   : > { %1328 = vmatpush3.bf16.xpose.msra.mxu1 %v1327_v20  ;;  %v1384_v20 = vpack.c.bf16 %v421_v19, %v420_v18 }
  0xe2   : > { %1329 = vmatprep.subr.bf16.mxu1 %v1814_v0 }
  0xe9   : > { %1331 = vmatpush3.bf16.xpose.msra.mxu1 %v1330_v26  ;;  %v1390_v26 = vpack.c.bf16 %v425_v25, %v424_v24 }
  0xea   : > { %1332 = vmatprep.subr.bf16.mxu1 %v1814_v0 }
  0xf1   : > { %1334 = vmatpush3.bf16.xpose.msra.mxu1 %v1333_v32  ;;  %v1396_v32 = vpack.c.bf16 %v397_v31, %v396_v30 }
  0xf2   : > { %1335 = vmatprep.subr.bf16.mxu1 %v1814_v0 }
  0xf9   : > { %1337 = vmatpush3.bf16.xpose.msra.mxu1 %v1336_v38  ;;  %v1402_v38 = vpack.c.bf16 %v401_v37, %v400_v36 }
  0xfa   : > { %1338 = vmatprep.subr.bf16.mxu1 %v1814_v0 }
 0x101   : > { %1340 = vmatpush3.bf16.xpose.msra.mxu1 %v1339_v43  ;;  %v405_v43 = vld [vmem:[#allocation8 + $0x48] sm:$0xff] }
 0x102   : > { %1341 = vmatprep.subr.bf16.mxu1 %v1814_v0  ;;  %v1408_v44 = vpack.c.bf16 %v405_v43, %v404_v42 }
 0x109   : > { %1343 = vmatpush3.bf16.xpose.msra.mxu1 %v1342_v47  ;;  %v408_v47 = vld [vmem:[#allocation8 + $0x60] sm:$0xff] }
 0x10a   : > { %1344 = vmatprep.subr.bf16.mxu1 %v1814_v0  ;;  %v1414_v49 = vpack.c.bf16 %v409_v48, %v408_v47 }
 0x111   : > { %1346 = vmatpush3.bf16.xpose.msra.mxu1 %v1345_v50  ;;  %v410_v50 = vld [vmem:[#allocation8 + $0x70] sm:$0xff] }
 0x1a6   : > { %v2192_v51 = vpop.f32.mrb[0].mxu1 }
 0x1a7   : > { %v1158_v52 = vpop.f32.mrb[1].mxu1  ;;  %1192 = vmatmul.mubr.f32.vlgmr.msra.gmra.mrb[2].mxu1 %v2192_v51 }
 0x27a   : > { %v581_v55 = vpop.f32.mrb[2].mxu1 }
 0x27b   : > { %v1193_v56 = vpop.f32.mrb[3].mxu1  ;;  %v588_v57 = vsel %vm587_vm1, %v581_v55, -1e+30 }
 0x27c   : > { %589 = vmax.xlane.f32.xlu0 %v588_v57 }
 0x309   : > { %v590_v58 = vpop.xlane.xlu0 %589 }
 0x30a   : > { %v591_v59 = vsub.f32 %v588_v57, %v590_v58 }
 0x30c   : > { %v592_v60 = vmul.f32 1.442695, %v591_v59 }
 0x30e   : > { %1529 = vpow2.f32 %v592_v60 }
 0x318   : > { %v1530_v61 = vpop.eup %1529 }
 0x319   : > { %594 = vadd.xlane.f32.xlu0 %v1530_v61 }
 0x3a6   : > { %v595_v62 = vpop.xlane.xlu0 %594 }
 0x3a7   : > { %1531 = vrcp.f32 %v595_v62 }
 0x3b1   : > { %v1532_v63 = vpop.eup %1531 }
 0x3b2   : > { %v597_v2 = vmul.f32 %v1532_v63, %v595_v62 }
 0x3b4   : > { %v598_v3 = vsub.f32 2.0, %v597_v2 }
 0x3b6   : > { %v599_v6 = vmul.f32 %v1532_v63, %v598_v3 }
 0x3b8   : > { %v600_v8 = vmul.f32 %v1530_v61, %v599_v6 }
 0x3ba   : > { %1227 = vmatmul.mubr.f32.vlgmr.msra.gmra.mrb[0].mxu0 %v600_v8  ;;  %813 = vst [vmem:[%s379_s27] sm:$0xff] %v600_v8 }
 0x3bb   : > { %1373 = vmatpush3.bf16.msra.mxu0 %v1372_v7  ;;  %1261 = vmatprep.mubr.msk.f32.mxu0 %vm1815_vm0, %v1816_v1 }
 0x3bc   : > { %1374 = vmatprep.subr.bf16.mxu0 %v1814_v0 }
 0x3bf   : > { %1376 = vmatpush3.bf16.msra.mxu0 %v1375_v11 }
 0x3c0   : > { %1377 = vmatprep.subr.bf16.mxu0 %v1814_v0 }
 0x3c3   : > { %1379 = vmatpush3.bf16.msra.mxu0 %v1378_v14 }
 0x3c4   : > { %1380 = vmatprep.subr.bf16.mxu0 %v1814_v0 }
 0x3c7   : > { %1382 = vmatpush3.bf16.msra.mxu0 %v1381_v17 }
 0x3c8   : > { %1383 = vmatprep.subr.bf16.mxu0 %v1814_v0 }
 0x3cb   : > { %1385 = vmatpush3.bf16.msra.mxu0 %v1384_v20 }
 0x3cc   : > { %1386 = vmatprep.subr.bf16.mxu0 %v1814_v0 }
 0x3cf   : > { %1388 = vmatpush3.bf16.msra.mxu0 %v1387_v23 }
 0x3d0   : > { %1389 = vmatprep.subr.bf16.mxu0 %v1814_v0 }
 0x3d3   : > { %1391 = vmatpush3.bf16.msra.mxu0 %v1390_v26 }
 0x3d4   : > { %1392 = vmatprep.subr.bf16.mxu0 %v1814_v0 }
 0x3d7   : > { %1394 = vmatpush3.bf16.msra.mxu0 %v1393_v29 }
 0x3d8   : > { %1395 = vmatprep.subr.bf16.mxu0 %v1814_v0 }
 0x3da   : > { %1262 = vmatmul.mubr.f32.vlgmr.msra.gmra.mrb[2].mxu0 %v2192_v51  ;;  %v411_v51 = vld [vmem:[#allocation8 + $0x78] sm:$0xff] }
 0x3db   : > { %1397 = vmatpush3.bf16.msra.mxu0 %v1396_v32  ;;  %1296 = vmatprep.mubr.msk.f32.mxu0 %vm1815_vm0, %v1816_v1  ;;  %v406_v1 = vld [vmem:[#allocation8 + $0x50] sm:$0xff]  ;;  %v1417_v52 = vpack.c.bf16 %v411_v51, %v410_v50 }
 0x3dc   : > { %1398 = vmatprep.subr.bf16.mxu0 %v1814_v0  ;;  %v1411_v46 = vpack.c.bf16 %v407_v45, %v406_v1 }
 0x3df   : > { %1400 = vmatpush3.bf16.msra.mxu0 %v1399_v35 }
 0x3e0   : > { %1401 = vmatprep.subr.bf16.mxu0 %v1814_v0 }
 0x3e3   : > { %1403 = vmatpush3.bf16.msra.mxu0 %v1402_v38 }
 0x3e4   : > { %1404 = vmatprep.subr.bf16.mxu0 %v1814_v0 }
 0x3e7   : > { %1406 = vmatpush3.bf16.msra.mxu0 %v1405_v41 }
 0x3e8   : > { %1407 = vmatprep.subr.bf16.mxu0 %v1814_v0 }
 0x3eb   : > { %1409 = vmatpush3.bf16.msra.mxu0 %v1408_v44 }
 0x3ec   : > { %1410 = vmatprep.subr.bf16.mxu0 %v1814_v0 }
 0x3ef   : > { %1412 = vmatpush3.bf16.msra.mxu0 %v1411_v46 }
 0x3f0   : > { %1413 = vmatprep.subr.bf16.mxu0 %v1814_v0 }
 0x3f3   : > { %1415 = vmatpush3.bf16.msra.mxu0 %v1414_v49 }
 0x3f4   : > { %1416 = vmatprep.subr.bf16.mxu0 %v1814_v0 }
 0x3f7   : > { %1418 = vmatpush3.bf16.msra.mxu0 %v1417_v52 }
 0x48d   : > { %v667_v53 = vpop.f32.mrb[0].mxu0 }
 0x48e   : > { %v1228_v54 = vpop.f32.mrb[1].mxu0  ;;  %1297 = vmatmul.mubr.f32.vlgmr.msra.gmra.mrb[2].mxu0 %v667_v53 }
 0x48f   : > { %1692 = shalt.err (!%p1689_p11)
}
 0x490   : > { %s1693_s12 = scalar_lea.hbm %s2224_s15, 128  ;;  %s1697_s18 = scalar_lea.hbm %s2307_s6, 256 }
 0x491   : > { %p1694_p12 = scmp.ne.s32.totalorder %s2224_s15, %s1693_s12  ;;  %p1698_p9 = scmp.lt.u32.totalorder %s2224_s15, %s2307_s6 }
 0x492   : > { %p1699_p0 = scmp.lt.u32.totalorder %s1697_s18, %s1693_s12  ;;  %p1701_p4 = scmp.lt.u32.totalorder %s1693_s12, %s2224_s15 }
 0x493   : > { %p1695_p6 = pnand %p1694_p12, %p2010_p10 }
 0x494   : > { %p1700_p2 = por %p1699_p0, %p1698_p9 }
 0x495   : > { %p1696_p7 = pneg %p1695_p6 }
 0x496   : > { %p1702_p8 = por %p1701_p4, %p1700_p2 }
 0x498   : > { %p1703_p1 = pnand %p1702_p8, %p1696_p7 }
 0x49a   : > { %1706 = shalt.err (!%p1703_p1)
}
 0x49b   : > { %1438 = dma.vmem_to_hbm [thread:$0]  (%p2010_p10), %s849_s9, 128, %s2224_s15, %s820_s17  }
 0x49c   : > { %s372_s20 = scalar_lea.vmem [#allocation11], %s2115_s11  ;;  %s2252_s8 = scalar_lea.hbm %s2306_s5, %s1034_s29 }
 0x49d   : > { %s834_s28 = sshll.u32 %s372_s20, 4  ;;  %s815_s21 = scalar_lea.sflag [#allocation4], %s2112_s16  ;;  %s2254_s28 = int_to_ptr.vmem [resolvable:$true] %s834_s28 }
 0x49e   : > { %s1707_s15 = scalar_lea.vmem %s2254_s28, 128  ;;  %s1818_s11 = smov [#allocation11]  }
 0x49f   : > { %p1708_p13 = scmp.ne.s32.totalorder %s2254_s28, %s1707_s15  ;;  %s1711_s24 = sshll.u32 %s1818_s11, 4  ;;  %s1712_s24 = int_to_ptr.vmem [resolvable:$false] %s1711_s24 }
 0x4a0   : > { %s1713_s9 = scalar_lea.vmem %s1712_s24, 256  ;;  %p1714_p11 = scmp.lt.s32.totalorder %s2254_s28, %s1712_s24 }
 0x4a1   : > { %p1709_p3 = pnand %p1708_p13, %p2010_p10  ;;  %p1715_p12 = scmp.lt.s32.totalorder %s1713_s9, %s1707_s15 }
 0x4a3   : > { %p1710_p5 = pneg %p1709_p3  ;;  %p1716_p6 = por %p1715_p12, %p1714_p11 }
 0x4a5   : > { %p1717_p7 = pnand %p1716_p6, %p1710_p5 }
 0x561   : > { %v807_v0 = vpop.f32.mrb[2].mxu0 }
 0x562   : > { %1533 = vtanh.f32 %v807_v0  ;;  %v1298_v55 = vpop.f32.mrb[3].mxu0 }
 0x56c   : > { %v1534_v56 = vpop.eup %1533 }
 0x56d   : > { %812 = vst [vmem:[%s372_s20] sm:$0xff] %v1534_v56 }
 0x56e   : > { %1720 = shalt.err (!%p1717_p7)
}
 0x56f   : > { %s1721_s16 = scalar_lea.hbm %s2252_s8, 128  ;;  %s1725_s12 = scalar_lea.hbm %s2306_s5, 256 }
 0x570   : > { %p1722_p9 = scmp.ne.s32.totalorder %s2252_s8, %s1721_s16  ;;  %p1726_p4 = scmp.lt.u32.totalorder %s2252_s8, %s2306_s5 }
 0x571   : > { %p1727_p8 = scmp.lt.u32.totalorder %s1725_s12, %s1721_s16  ;;  %p1729_p13 = scmp.lt.u32.totalorder %s1721_s16, %s2252_s8 }
 0x572   : > { %p1723_p0 = pnand %p1722_p9, %p2010_p10 }
 0x573   : > { %p1728_p1 = por %p1727_p8, %p1726_p4 }
 0x574   : > { %p1724_p2 = pneg %p1723_p0 }
 0x575   : > { %p1730_p3 = por %p1729_p13, %p1728_p1 }
 0x577   : > { %p1731_p5 = pnand %p1730_p3, %p1724_p2 }
 0x579   : > { %1734 = shalt.err (!%p1731_p5)
}
 0x57a   : > { %1437 = dma.vmem_to_hbm [thread:$0]  (%p2010_p10), %s2254_s28, 128, %s2252_s8, %s815_s21  }
 0x57b PF: > { %s2338_s18 = sld [smem:[#allocation20_spill]]  ;;  %s2339_s13 = sld [smem:[#allocation21_spill]] }
 0x57c   : > { %p2341_p12 = scmp.ge.s32.totalorder %s1805_s26, 2 }
 0x581   : > { %s860_s27 = sand.u32 1, %s2338_s18   ;;  %p2340_p11 = scmp.ne.s32.totalorder %s2339_s13, 0 }
 0x582   : > { %s861_s20 = scalar_lea.sflag [#allocation4], %s860_s27 }
 0x583   : > { %p1459_p6 = pnand %p2341_p12, %p2340_p11 }
 0x585   : > { %1776 = dma.done.wait (!%p1459_p6), %s861_s20, 128  }
 0x586   : > { %1778 = vsyncadd (!%p1459_p6), %s861_s20, 4294967168  ;;  %s870_s14 = scalar_lea.sflag [#allocation13], %s860_s27 }
 0x587   : > { %1780 = dma.done.wait (!%p1459_p6), %s870_s14, 128  }
 0x588   : > { %1782 = vsyncadd (!%p1459_p6), %s870_s14, 4294967168  ;;  %s30_s26 = sadd.s32 1, %s1805_s26   ;;  %s2342_s21 = smov %s1789_s22 }
 0x589   : > { %p27_p7 = scmp.ge.s32.totalorder %s30_s26, 4   ;;  %s2343_s22 = smov %s1793_s23 }
 0x58a   : > { %s2344_s23 = smov %s2025_s19  ;;  %s2345_s24 = smov %s1801_s25 }
 0x58b   : > { %s2346_s25 = smov %s2348_s10  ;;  %29 = sbr.rel (!%p27_p7) target bundleno = 14 (0xe), region = 127 }
 0x592   :  { %875 = vsyncpa [#allocation3], 1 }
 0x593   :  { %877 = vsyncpa [#allocation3 + $0x1], 1 }
 0x594   :  { %878 = vsyncpa [#allocation6], 1 }
 0x595   :  { %880 = vsyncpa [#allocation6 + $0x1], 1 }
 0x596   :  { %881 = vsyncpa [#allocation9], 1 }
 0x597   :  { %882 = vsyncpa [#allocation4], 1 }
 0x598   :  { %884 = vsyncpa [#allocation4 + $0x1], 1 }
 0x599   :  { %885 = vsyncpa [#allocation13], 1 }
 0x59a   :  { %887 = vsyncpa [#allocation13 + $0x1], 1 }

// kernel: tpu_custom_call.1
= control target key start
LH: loop header
LB: loop body
LE: loop exit
PB: predicated region body
PF: predicated region fallthrough
CT: control target
= control target key end

     0   :  { %s2301_s0 = inlined_call_operand.hbm [shape: f32[2,8,128], index: 0, kind: input, shape index: {}]   ;;  %s2302_s1 = inlined_call_operand.hbm [shape: f32[2,128,128], index: 1, kind: input, shape index: {}]   ;;  %s2303_s2 = inlined_call_operand.hbm [shape: f32[128,128], index: 2, kind: input, shape index: {}]   ;;  %s2304_s3 = inlined_call_operand.hbm [shape: f32[128,128], index: 3, kind: input, shape index: {}]   ;;  %s2305_s4 = inlined_call_operand.hbm [shape: f32[128,128], index: 4, kind: input, shape index: {}]   ;;  %s2306_s5 = inlined_call_operand.hbm [shape: f32[2,8,128], index: 5, kind: output, shape index: {0}]   ;;  %s2307_s6 = inlined_call_operand.hbm [shape: f32[2,8,128], index: 6, kind: output, shape index: {1}]  }
   0x1   :  { %2315 = sst [smem:[#allocation22_spill]] %s2301_s0 }
   0x2   :  { %2316 = sst [smem:[#allocation23_spill]] %s2303_s2 }
   0x3   :  { %12 = vsyncpa [#allocation3], 0 }
   0x4   :  { %14 = vsyncpa [#allocation3 + $0x1], 0 }
   0x5   :  { %15 = vsyncpa [#allocation6], 0 }
   0x6   :  { %17 = vsyncpa [#allocation6 + $0x1], 0 }
   0x7   :  { %18 = vsyncpa [#allocation9], 0 }
   0x8   :  { %19 = vsyncpa [#allocation4], 0 }
   0x9   :  { %21 = vsyncpa [#allocation4 + $0x1], 0 }
   0xa   :  { %22 = vsyncpa [#allocation13], 0 }
   0xb   :  { %24 = vsyncpa [#allocation13 + $0x1], 0  ;;  %s1854_s21 = smov 0   ;;  %s1856_s22 = smov 0  }
   0xc   :  { %s1858_s23 = smov 0   ;;  %s1860_s24 = smov 0  }
   0xd   :  { %s1862_s25 = smov 0   ;;  %s1864_s26 = smov 0  }
   0xe LB: > { %2317 = sst [smem:[#allocation20_spill]] %s1785_s21  ;;  %s1885_s27 = sadd.s32 4294967295, %s1805_s26   ;;  %s1805_s26 = sphi %s1864_s26, %s30_s26   ;;  %s1801_s25 = sphi %s1862_s25, %s2346_s25   ;;  %s1797_s24 = sphi %s1860_s24, %s2345_s24   ;;  %s1793_s23 = sphi %s1858_s23, %s2344_s23   ;;  %s1789_s22 = sphi %s1856_s22, %s2343_s22   ;;  %s1785_s21 = sphi %s1854_s21, %s2342_s21  }
   0xf   : > { %s1013_s28 = sadd.s32 4294967294, %s1805_s26   ;;  %p64_p0 = scmp.ne.s32.totalorder %s1789_s22, %s1785_s21 }
  0x10   : > { %p2308_p1 = scmp.eq.s32.totalorder %s1885_s27, 0  ;;  %p185_p3 = scmp.eq.s32.totalorder %s1013_s28, 1 }
  0x11   : > { %p1014_p5 = scmp.ge.s32.totalorder %s1805_s26, 1  ;;  %p220_p7 = scmp.lt.s32.totalorder %s1805_s26, 3 }
  0x12   : > { %p1894_p4 = por %p2308_p1, %p64_p0  ;;  %p1899_p6 = por %p185_p3, %p64_p0 }
  0x13   : > { %p1904_p8 = pnand %p1014_p5, %p220_p7  ;;  %s1807_s8 = smov [#allocation7]  }
  0x14   : > { %s2318_s29 = scalar_select %p1894_p4, 1, 0 }
  0x15   : > { %s2319_s30 = scalar_select %p1899_p6, 1, 0 }
  0x16   : > { %s2321_s7 = scalar_select %p1904_p8, 1, 0 }
  0x17   : > { %2320 = sst [smem:[#allocation21_spill]] %s2319_s30  ;;  %s232_s9 = sshll.u32 %s1807_s8, 4  ;;  %s1908_s9 = int_to_ptr.vmem [resolvable:$true] %s232_s9 }
  0x18   : > { %p1441_p9 = pneg %p1904_p8  ;;  %s1808_s11 = smov [#allocation8]  }
  0x19   : > { %s245_s12 = sshll.u32 %s1808_s11, 4  ;;  %s1809_s13 = smov [#allocation10]   ;;  %s1919_s12 = int_to_ptr.vmem [resolvable:$true] %s245_s12 }
  0x1a   : > { %p1915_p11 = pnand %p1441_p9, %p2308_p1  ;;  %s1921_s14 = sshll.u32 %s1809_s13, 4  ;;  %s259_s14 = int_to_ptr.vmem [resolvable:$true] %s1921_s14 }
  0x1b   : > { %s2323_s2 = sld [smem:[#allocation23_spill]] }
  0x1c   : > { %p1931_p13 = pneg %p1915_p11 }
  0x21   : > { %s1535_s17 = scalar_lea.hbm %s2323_s2, 2048 }
  0x22   : > { %p1536_p12 = scmp.ne.s32.totalorder %s2323_s2, %s1535_s17  ;;  %p1542_p5 = scmp.lt.u32.totalorder %s1535_s17, %s2323_s2 }
  0x24   : > { %p1538_p0 = pnand %p1931_p13, %p1536_p12 }
  0x26   : > { %p1539_p3 = pneg %p1538_p0 }
  0x28   : > { %p1544_p7 = pnand %p1542_p5, %p1539_p3 }
  0x2a   : > { %1547 = shalt.err (!%p1544_p7)
}
  0x2b   : > { %s1548_s11 = scalar_lea.vmem %s1908_s9, 2048  ;;  %p1556_p2 = scmp.lt.s32.totalorder %s1908_s9, %s1908_s9 }
  0x2c   : > { %p1549_p9 = scmp.ne.s32.totalorder %s1908_s9, %s1548_s11  ;;  %p1557_p6 = scmp.lt.s32.totalorder %s1548_s11, %s1548_s11 }
  0x2e   : > { %p1551_p10 = pnand %p1549_p9, %p1931_p13  ;;  %p1558_p12 = por %p1557_p6, %p1556_p2 }
  0x30   : > { %p1552_p1 = pneg %p1551_p10 }
  0x32   : > { %p1559_p0 = pnand %p1558_p12, %p1552_p1 }
  0x34   : > { %1562 = shalt.err (!%p1559_p0)
}
  0x35   : > { %s2313_s13 = smov 128   ;;  %s2314_s15 = smov 8  }
  0x36   : > { %1444 = dma.hbm_to_vmem [thread:$0]  (!%p1915_p11), %s2323_s2, 2048, %s1908_s9, [#allocation6], %s2313_s13, %s2313_s13, %s2314_s15  }
  0x37   : > { %s1563_s28 = scalar_lea.hbm %s2304_s3, 2048 }
  0x38   : > { %p1564_p1 = scmp.ne.s32.totalorder %s2304_s3, %s1563_s28  ;;  %p1570_p10 = scmp.lt.u32.totalorder %s1563_s28, %s2304_s3 }
  0x3a   : > { %p1566_p2 = pnand %p1564_p1, %p1931_p13 }
  0x3c   : > { %p1567_p6 = pneg %p1566_p2 }
  0x3e   : > { %p1572_p3 = pnand %p1570_p10, %p1567_p6 }
  0x40   : > { %1575 = shalt.err (!%p1572_p3)
}
  0x41   : > { %s1576_s9 = scalar_lea.vmem %s1919_s12, 2048  ;;  %p1584_p12 = scmp.lt.s32.totalorder %s1919_s12, %s1919_s12 }
  0x42   : > { %p1577_p5 = scmp.ne.s32.totalorder %s1919_s12, %s1576_s9  ;;  %p1585_p0 = scmp.lt.s32.totalorder %s1576_s9, %s1576_s9 }
  0x44   : > { %p1579_p7 = pnand %p1577_p5, %p1931_p13  ;;  %p1586_p1 = por %p1585_p0, %p1584_p12 }
  0x46   : > { %p1580_p9 = pneg %p1579_p7 }
  0x48   : > { %p1587_p2 = pnand %p1586_p1, %p1580_p9 }
  0x4a   : > { %1590 = shalt.err (!%p1587_p2)
}
  0x4b   : > { %1447 = dma.hbm_to_vmem [thread:$0]  (!%p1915_p11), %s2304_s3, 2048, %s1919_s12, [#allocation9], %s2313_s13, %s2313_s13, %s2314_s15  }
  0x4c   : > { %s1591_s18 = scalar_lea.hbm %s2305_s4, 2048 }
  0x4d   : > { %p1592_p6 = scmp.ne.s32.totalorder %s2305_s4, %s1591_s18  ;;  %p1598_p5 = scmp.lt.u32.totalorder %s1591_s18, %s2305_s4 }
  0x4f   : > { %p1594_p10 = pnand %p1592_p6, %p1931_p13 }
  0x51   : > { %p1595_p3 = pneg %p1594_p10 }
  0x53   : > { %p1600_p7 = pnand %p1598_p5, %p1595_p3 }
  0x55   : > { %1603 = shalt.err (!%p1600_p7)
}
  0x56   : > { %s1604_s9 = scalar_lea.vmem %s259_s14, 2048  ;;  %p1612_p1 = scmp.lt.s32.totalorder %s259_s14, %s259_s14 }
  0x57   : > { %p1605_p9 = scmp.ne.s32.totalorder %s259_s14, %s1604_s9  ;;  %p1613_p2 = scmp.lt.s32.totalorder %s1604_s9, %s1604_s9 }
  0x59   : > { %p1607_p12 = pnand %p1605_p9, %p1931_p13  ;;  %p1614_p4 = por %p1613_p2, %p1612_p1 }
  0x5b   : > { %p1608_p0 = pneg %p1607_p12 }
  0x5d   : > { %p1615_p8 = pnand %p1614_p4, %p1608_p0 }
  0x5f   : > { %1618 = shalt.err (!%p1615_p8)
}
  0x60   : > { %1450 = dma.hbm_to_vmem [thread:$0]  (!%p1915_p11), %s2305_s4, 2048, %s259_s14, [#allocation9], %s2313_s13, %s2313_s13, %s2314_s15  }
  0x61   : > { %s51_s20 = sadd.s32 1, %s1793_s23  ;;  %s42_s10 = sadd.s32 1, %s1801_s25 }
  0x62   : > { %p58_p4 = scmp.ne.s32.totalorder %s1793_s23, %s1789_s22  ;;  %p44_p8 = scmp.ge.s32.totalorder %s42_s10, 2 }
  0x63   : > { %p59_p13 = scmp.eq.s32.totalorder %s1805_s26, 0  ;;  %p2325_p6 = scmp.eq.s32.totalorder %s1885_s27, 1 }
  0x64   : > { %p1468_p3 = scmp.lt.s32.totalorder %s1805_s26, 2  ;;  %s2348_s10 = smov (%p44_p8, %s42_s10), 0 }
  0x65   : > { %p2010_p10 = por %p2325_p6, %p58_p4  ;;  %p60_p5 = por %p59_p13, %p58_p4 }
  0x66   : > { %s2018_s16 = sand.u32 1, %s1793_s23   ;;  %s46_s14 = ssub.s32 %s1801_s25, %s2348_s10 }
  0x67   : > { %p49_p11 = scmp.eq.s32.totalorder %s46_s14, 0  ;;  %s1019_s17 = sshll.u32 %s2018_s16, 3 }
  0x68   : > { %s1020_s18 = sshll.u32 %s1801_s25, 7  ;;  %s2327_s0 = sld [smem:[#allocation22_spill]] }
  0x69   : > { %s2025_s19 = scalar_select %p49_p11, %s1793_s23, %s51_s20  }
  0x6a   : > { %s276_s9 = scalar_lea.vmem [#allocation2], %s1019_s17  ;;  %p2036_p7 = pnand %p1468_p3, %p60_p5 }
  0x6b   : > { %s284_s12 = sshll.u32 %s276_s9, 4  ;;  %s1021_s20 = sshll.u32 %s2018_s16, 7  ;;  %s2032_s12 = int_to_ptr.vmem [resolvable:$true] %s284_s12 }
  0x6c   : > { %s273_s28 = scalar_lea.sflag [#allocation3], %s2018_s16  ;;  %p1621_p12 = pneg %p2036_p7 }
  0x6e   : > { %s2030_s11 = scalar_lea.hbm %s2327_s0, %s1020_s18  ;;  %s1624_s9 = scalar_lea.hbm %s2327_s0, 256 }
  0x6f   : > { %s1619_s18 = scalar_lea.hbm %s2030_s11, 128  ;;  %p1625_p2 = scmp.lt.u32.totalorder %s2030_s11, %s2327_s0 }
  0x70   : > { %p1620_p9 = scmp.ne.s32.totalorder %s2030_s11, %s1619_s18  ;;  %p1626_p4 = scmp.lt.u32.totalorder %s1624_s9, %s1619_s18 }
  0x71   : > { %p1628_p13 = scmp.lt.u32.totalorder %s1619_s18, %s2030_s11 }
  0x72   : > { %p1622_p0 = pnand %p1621_p12, %p1620_p9  ;;  %p1627_p8 = por %p1626_p4, %p1625_p2 }
  0x74   : > { %p1623_p1 = pneg %p1622_p0  ;;  %p1629_p6 = por %p1628_p13, %p1627_p8 }
  0x76   : > { %p1630_p3 = pnand %p1629_p6, %p1623_p1 }
  0x78   : > { %1633 = shalt.err (!%p1630_p3)
}
  0x79   : > { %s1634_s14 = scalar_lea.vmem %s2032_s12, 128  ;;  %s1812_s17 = smov [#allocation2]  }
  0x7a   : > { %p1635_p5 = scmp.ne.s32.totalorder %s2032_s12, %s1634_s14  ;;  %s1639_s8 = sshll.u32 %s1812_s17, 4  ;;  %s1640_s8 = int_to_ptr.vmem [resolvable:$false] %s1639_s8 }
  0x7b   : > { %s1641_s13 = scalar_lea.vmem %s1640_s8, 256  ;;  %p1642_p0 = scmp.lt.s32.totalorder %s2032_s12, %s1640_s8 }
  0x7c   : > { %p1637_p11 = pnand %p1635_p5, %p1621_p12  ;;  %p1643_p2 = scmp.lt.s32.totalorder %s1641_s13, %s1634_s14 }
  0x7e   : > { %p1638_p9 = pneg %p1637_p11  ;;  %p1644_p4 = por %p1643_p2, %p1642_p0 }
  0x80   : > { %p1645_p8 = pnand %p1644_p4, %p1638_p9 }
  0x82   : > { %1648 = shalt.err (!%p1645_p8)
}
  0x83   : > { %1454 = dma.hbm_to_vmem [thread:$0]  (!%p2036_p7), %s2030_s11, 128, %s2032_s12, %s273_s28  }
  0x84   : > { %s295_s15 = scalar_lea.vmem [#allocation5], %s1021_s20  ;;  %s291_s9 = sand.u32 1, %s1805_s26  }
  0x85   : > { %s302_s18 = sshll.u32 %s295_s15, 4  ;;  %s2329_s17 = sshll.u32 %s1801_s25, 11  ;;  %s2071_s18 = int_to_ptr.vmem [resolvable:$true] %s302_s18 }
  0x86   : > { %s2078_s13 = scalar_lea.hbm %s2302_s1, %s2329_s17  ;;  %s2080_s0 = scalar_lea.sflag [#allocation6], %s291_s9 }
  0x87   : > { %s1649_s2 = scalar_lea.hbm %s2078_s13, 2048  ;;  %s1654_s12 = scalar_lea.hbm %s2302_s1, 4096 }
  0x88   : > { %p1650_p1 = scmp.ne.s32.totalorder %s2078_s13, %s1649_s2  ;;  %p1655_p3 = scmp.lt.u32.totalorder %s2078_s13, %s2302_s1 }
  0x89   : > { %p1656_p5 = scmp.lt.u32.totalorder %s1654_s12, %s1649_s2  ;;  %p1658_p9 = scmp.lt.u32.totalorder %s1649_s2, %s2078_s13 }
  0x8a   : > { %p1652_p13 = pnand %p1650_p1, %p1621_p12 }
  0x8b   : > { %p1657_p11 = por %p1656_p5, %p1655_p3 }
  0x8c   : > { %p1653_p6 = pneg %p1652_p13 }
  0x8d   : > { %p1659_p0 = por %p1658_p9, %p1657_p11 }
  0x8f   : > { %p1660_p2 = pnand %p1659_p0, %p1653_p6 }
  0x91   : > { %1663 = shalt.err (!%p1660_p2)
}
  0x92   : > { %s1664_s15 = scalar_lea.vmem %s2071_s18, 2048  ;;  %s1813_s9 = smov [#allocation5]  }
  0x93   : > { %p1665_p4 = scmp.ne.s32.totalorder %s2071_s18, %s1664_s15  ;;  %s1669_s17 = sshll.u32 %s1813_s9, 4  ;;  %s1670_s17 = int_to_ptr.vmem [resolvable:$false] %s1669_s17 }
  0x94   : > { %s1671_s14 = scalar_lea.vmem %s1670_s17, 4096  ;;  %p1672_p13 = scmp.lt.s32.totalorder %s2071_s18, %s1670_s17 }
  0x95   : > { %p1667_p8 = pnand %p1665_p4, %p1621_p12  ;;  %p1673_p3 = scmp.lt.s32.totalorder %s1671_s14, %s1664_s15 }
  0x97   : > { %p1668_p1 = pneg %p1667_p8  ;;  %p1674_p5 = por %p1673_p3, %p1672_p13 }
  0x99   : > { %p1675_p11 = pnand %p1674_p5, %p1668_p1 }
  0x9b   : > { %1678 = shalt.err (!%p1675_p11)
}
  0x9c   : > { %s2330_s2 = smov 8   ;;  %s2331_s8 = smov 128  }
  0x9d   : > { %1457 = dma.hbm_to_vmem [thread:$0]  (!%p2036_p7), %s2078_s13, 2048, %s2071_s18, %s2080_s0, %s2331_s8, %s2331_s8, %s2330_s2  }
  0x9e   : > { %p2332_p12 = scmp.ne.s32.totalorder %s2321_s7, 0 }
  0x9f   : > { %s2112_s16 = sand.u32 (!%p2332_p12), 1, %s1789_s22   ;;  %p2333_p6 = scmp.ne.s32.totalorder (!%p2332_p12), %s2318_s29, 0 }
  0xa0   : > { %314 = sbr.rel (%p2332_p12) target bundleno = 1403 (0x57b), region = 40  ;;  %s2115_s11 = sshll.u32 (!%p2332_p12), %s2112_s16, 3 }
  0xa1   : > { %s317_s21 = scalar_lea.sflag (!%p2332_p12), [#allocation3], %s2112_s16  ;;  %s320_s12 = scalar_lea.vmem (!%p2332_p12), [#allocation2], %s2115_s11 }
  0xa7   : > { %1760 = dma.done.wait (%p2333_p6), %s317_s21, 128  }
  0xa8   : > { %1762 = vsyncadd (%p2333_p6), %s317_s21, 4294967168  ;;  %s325_s0 = sand.u32 1, %s1885_s27   ;;  %s1026_s7 = sshll.u32 %s2112_s16, 7 }
  0xa9   : > { %s326_s18 = scalar_lea.sflag [#allocation6], %s325_s0  ;;  %s2125_s13 = scalar_lea.vmem [#allocation5], %s1026_s7 }
  0xaa   : > { %1764 = dma.done.wait (%p2333_p6), %s326_s18, 2048  }
  0xab   : > { %1766 = vsyncadd (%p2333_p6), %s326_s18, 4294965248  ;;  %p2334_p7 = scmp.eq.s32.totalorder %s1885_s27, 0 }
  0xad   : > { %1768 = dma.done.wait (%p2334_p7), [#allocation6], 2048   ;;  %p2335_p9 = pmov %p2334_p7 }
  0xae   : > { %p2336_p0 = pmov %p2334_p7 }
  0xaf   : > { %1770 = vsyncadd (%p2335_p9), [#allocation6], 4294965248 }
  0xb0   : > { %1772 = dma.done.wait (%p2336_p0), [#allocation9], 4096   ;;  %p2337_p2 = pmov %p2336_p0 }
  0xb1   : > { %v1814_v0 = vmov 0.0|0.0   ;;  %vm1815_vm0 = vmmov 0   ;;  %v1816_v1 = vmov 0.0   ;;  %v380_v2 = vld [vmem:[#allocation7] sm:$0xff]  ;;  %v381_v3 = vld [vmem:[#allocation7 + $0x8] sm:$0xff]  ;;  %v382_v4 = vld [vmem:[#allocation7 + $0x10] sm:$0xff]  ;;  %v585_v53 = vlaneseq }
  0xb2   : > { %1774 = vsyncadd (%p2337_p2), [#allocation9], 4294963200  ;;  %1299 = vmatprep.subr.bf16.mxu1 %v1814_v0  ;;  %1156 = vmatprep.mubr.msk.f32.mxu1 %vm1815_vm0, %v1816_v1  ;;  %v1300_v5 = vpack.c.bf16 %v381_v3, %v380_v2  ;;  %v383_v6 = vld [vmem:[#allocation7 + $0x18] sm:$0xff]  ;;  %v384_v8 = vld [vmem:[#allocation7 + $0x20] sm:$0xff]  ;;  %s379_s27 = scalar_lea.vmem [#allocation12], %s2115_s11  ;;  %s1034_s29 = sshll.u32 %s1797_s24, 7 }
  0xb3   : > { %1347 = vmatprep.subr.bf16.mxu0 %v1814_v0  ;;  %1226 = vmatprep.mubr.msk.f32.mxu0 %vm1815_vm0, %v1816_v1  ;;  %v1303_v7 = vpack.c.bf16 %v383_v6, %v382_v4  ;;  %v385_v9 = vld [vmem:[#allocation7 + $0x28] sm:$0xff]  ;;  %v429_v10 = vld [vmem:[%s2125_s13] sm:$0xff]  ;;  %v386_v13 = vld [vmem:[#allocation7 + $0x30] sm:$0xff]  ;;  %v586_v54 = vand.u32 127, %v585_v53  ;;  %s2224_s15 = scalar_lea.hbm %s2307_s6, %s1034_s29  ;;  %s848_s9 = sshll.u32 %s379_s27, 4  ;;  %s849_s9 = int_to_ptr.vmem [resolvable:$true] %s848_s9 }
  0xb4   : > { %1301 = vmatpush3.bf16.msra.mxu1 %v1300_v5  ;;  %v430_v11 = vld [vmem:[%s2125_s13 + $0x8] sm:$0xff]  ;;  %v1306_v12 = vpack.c.bf16 %v385_v9, %v384_v8  ;;  %v387_v15 = vld [vmem:[#allocation7 + $0x38] sm:$0xff]  ;;  %v431_v16 = vld [vmem:[%s2125_s13 + $0x10] sm:$0xff]  ;;  %s820_s17 = scalar_lea.sflag [#allocation13], %s2112_s16  ;;  %s1679_s14 = scalar_lea.vmem %s849_s9, 128 }
  0xb5   : > { %1302 = vmatprep.subr.bf16.mxu1 %v1814_v0  ;;  %v2148_v14 = vpack.c.bf16 %v430_v11, %v429_v10  ;;  %v432_v17 = vld [vmem:[%s2125_s13 + $0x18] sm:$0xff]  ;;  %v1309_v18 = vpack.c.bf16 %v387_v15, %v386_v13  ;;  %v388_v19 = vld [vmem:[#allocation7 + $0x40] sm:$0xff]  ;;  %v389_v21 = vld [vmem:[#allocation7 + $0x48] sm:$0xff]  ;;  %vm587_vm1 = vcmp.lt.s32.totalorder %v586_v54, 8  ;;  %p1680_p4 = scmp.ne.s32.totalorder %s849_s9, %s1679_s14  ;;  %s1817_s2 = smov [#allocation12]  }
  0xb6   : > { %v1327_v20 = vpack.c.bf16 %v432_v17, %v431_v16  ;;  %v433_v22 = vld [vmem:[%s2125_s13 + $0x20] sm:$0xff]  ;;  %v434_v23 = vld [vmem:[%s2125_s13 + $0x28] sm:$0xff]  ;;  %v1312_v24 = vpack.c.bf16 %v389_v21, %v388_v19  ;;  %v390_v25 = vld [vmem:[#allocation7 + $0x50] sm:$0xff]  ;;  %s1683_s8 = sshll.u32 %s1817_s2, 4  ;;  %s1684_s8 = int_to_ptr.vmem [resolvable:$false] %s1683_s8 }
  0xb7   : > { %1349 = vmatpush3.bf16.msra.mxu0 %v2148_v14  ;;  %v1330_v26 = vpack.c.bf16 %v434_v23, %v433_v22  ;;  %v391_v27 = vld [vmem:[#allocation7 + $0x58] sm:$0xff]  ;;  %v435_v28 = vld [vmem:[%s2125_s13 + $0x30] sm:$0xff]  ;;  %v392_v31 = vld [vmem:[#allocation7 + $0x60] sm:$0xff]  ;;  %p1681_p8 = pnand %p1680_p4, %p2010_p10  ;;  %s1685_s21 = scalar_lea.vmem %s1684_s8, 256 }
  0xb8   : > { %1304 = vmatpush3.bf16.msra.mxu1 %v1303_v7  ;;  %1350 = vmatprep.subr.bf16.mxu0 %v1814_v0  ;;  %v436_v29 = vld [vmem:[%s2125_s13 + $0x38] sm:$0xff]  ;;  %v1315_v30 = vpack.c.bf16 %v391_v27, %v390_v25  ;;  %v393_v33 = vld [vmem:[#allocation7 + $0x68] sm:$0xff]  ;;  %v437_v34 = vld [vmem:[%s2125_s13 + $0x40] sm:$0xff]  ;;  %p1686_p13 = scmp.lt.s32.totalorder %s849_s9, %s1684_s8  ;;  %p1687_p3 = scmp.lt.s32.totalorder %s1685_s21, %s1679_s14 }
  0xb9   : > { %1305 = vmatprep.subr.bf16.mxu1 %v1814_v0  ;;  %v1333_v32 = vpack.c.bf16 %v436_v29, %v435_v28  ;;  %v438_v35 = vld [vmem:[%s2125_s13 + $0x48] sm:$0xff]  ;;  %v1318_v36 = vpack.c.bf16 %v393_v33, %v392_v31  ;;  %v394_v37 = vld [vmem:[#allocation7 + $0x70] sm:$0xff]  ;;  %v395_v39 = vld [vmem:[#allocation7 + $0x78] sm:$0xff]  ;;  %p1682_p1 = pneg %p1681_p8 }
  0xba   : > { %v1336_v38 = vpack.c.bf16 %v438_v35, %v437_v34  ;;  %v439_v40 = vld [vmem:[%s2125_s13 + $0x50] sm:$0xff]  ;;  %v440_v41 = vld [vmem:[%s2125_s13 + $0x58] sm:$0xff]  ;;  %v1321_v42 = vpack.c.bf16 %v395_v39, %v394_v37  ;;  %v441_v44 = vld [vmem:[%s2125_s13 + $0x60] sm:$0xff]  ;;  %p1688_p5 = por %p1687_p3, %p1686_p13 }
  0xbb   : > { %1352 = vmatpush3.bf16.msra.mxu0 %v1327_v20  ;;  %v1339_v43 = vpack.c.bf16 %v440_v41, %v439_v40  ;;  %v442_v45 = vld [vmem:[%s2125_s13 + $0x68] sm:$0xff]  ;;  %v428_v46 = vld [vmem:[%s320_s12] sm:$0xff]  ;;  %v412_v4 = vld [vmem:[#allocation10] sm:$0xff] }
  0xbc   : > { %1307 = vmatpush3.bf16.msra.mxu1 %v1306_v12  ;;  %1353 = vmatprep.subr.bf16.mxu0 %v1814_v0  ;;  %v1342_v47 = vpack.c.bf16 %v442_v45, %v441_v44  ;;  %v443_v48 = vld [vmem:[%s2125_s13 + $0x70] sm:$0xff]  ;;  %v444_v49 = vld [vmem:[%s2125_s13 + $0x78] sm:$0xff]  ;;  %v413_v5 = vld [vmem:[#allocation10 + $0x8] sm:$0xff]  ;;  %p1689_p11 = pnand %p1688_p5, %p1682_p1 }
  0xbd   : > { %1308 = vmatprep.subr.bf16.mxu1 %v1814_v0  ;;  %v1345_v50 = vpack.c.bf16 %v444_v49, %v443_v48  ;;  %v1372_v7 = vpack.c.bf16 %v413_v5, %v412_v4  ;;  %v414_v9 = vld [vmem:[#allocation10 + $0x10] sm:$0xff]  ;;  %v415_v10 = vld [vmem:[#allocation10 + $0x18] sm:$0xff]  ;;  %v416_v12 = vld [vmem:[#allocation10 + $0x20] sm:$0xff] }
  0xbe   : > { %v1375_v11 = vpack.c.bf16 %v415_v10, %v414_v9  ;;  %v417_v13 = vld [vmem:[#allocation10 + $0x28] sm:$0xff]  ;;  %v418_v15 = vld [vmem:[#allocation10 + $0x30] sm:$0xff]  ;;  %v419_v16 = vld [vmem:[#allocation10 + $0x38] sm:$0xff] }
  0xbf   : > { %1355 = vmatpush3.bf16.msra.mxu0 %v1330_v26  ;;  %v1381_v17 = vpack.c.bf16 %v419_v16, %v418_v15  ;;  %v421_v19 = vld [vmem:[#allocation10 + $0x48] sm:$0xff]  ;;  %v422_v21 = vld [vmem:[#allocation10 + $0x50] sm:$0xff]  ;;  %v423_v22 = vld [vmem:[#allocation10 + $0x58] sm:$0xff] }
  0xc0   : > { %1310 = vmatpush3.bf16.msra.mxu1 %v1309_v18  ;;  %1356 = vmatprep.subr.bf16.mxu0 %v1814_v0  ;;  %v420_v18 = vld [vmem:[#allocation10 + $0x40] sm:$0xff]  ;;  %v1387_v23 = vpack.c.bf16 %v423_v22, %v422_v21  ;;  %v425_v25 = vld [vmem:[#allocation10 + $0x68] sm:$0xff]  ;;  %v426_v27 = vld [vmem:[#allocation10 + $0x70] sm:$0xff] }
  0xc1   : > { %1311 = vmatprep.subr.bf16.mxu1 %v1814_v0  ;;  %v427_v28 = vld [vmem:[#allocation10 + $0x78] sm:$0xff]  ;;  %v397_v31 = vld [vmem:[#allocation8 + $0x8] sm:$0xff]  ;;  %v398_v33 = vld [vmem:[#allocation8 + $0x10] sm:$0xff] }
  0xc2   : > { %v1393_v29 = vpack.c.bf16 %v427_v28, %v426_v27  ;;  %v399_v34 = vld [vmem:[#allocation8 + $0x18] sm:$0xff]  ;;  %v401_v37 = vld [vmem:[#allocation8 + $0x28] sm:$0xff]  ;;  %v402_v39 = vld [vmem:[#allocation8 + $0x30] sm:$0xff] }
  0xc3   : > { %1358 = vmatpush3.bf16.msra.mxu0 %v1333_v32  ;;  %v1399_v35 = vpack.c.bf16 %v399_v34, %v398_v33  ;;  %v403_v40 = vld [vmem:[#allocation8 + $0x38] sm:$0xff]  ;;  %v409_v48 = vld [vmem:[#allocation8 + $0x68] sm:$0xff] }
  0xc4   : > { %1313 = vmatpush3.bf16.msra.mxu1 %v1312_v24  ;;  %1359 = vmatprep.subr.bf16.mxu0 %v1814_v0  ;;  %v424_v24 = vld [vmem:[#allocation10 + $0x60] sm:$0xff]  ;;  %v1405_v41 = vpack.c.bf16 %v403_v40, %v402_v39  ;;  %v407_v45 = vld [vmem:[#allocation8 + $0x58] sm:$0xff] }
  0xc5   : > { %1314 = vmatprep.subr.bf16.mxu1 %v1814_v0 }
  0xc7   : > { %1361 = vmatpush3.bf16.msra.mxu0 %v1336_v38 }
  0xc8   : > { %1316 = vmatpush3.bf16.msra.mxu1 %v1315_v30  ;;  %1362 = vmatprep.subr.bf16.mxu0 %v1814_v0  ;;  %v396_v30 = vld [vmem:[#allocation8] sm:$0xff] }
  0xc9   : > { %1317 = vmatprep.subr.bf16.mxu1 %v1814_v0 }
  0xcb   : > { %1364 = vmatpush3.bf16.msra.mxu0 %v1339_v43 }
  0xcc   : > { %1319 = vmatpush3.bf16.msra.mxu1 %v1318_v36  ;;  %1365 = vmatprep.subr.bf16.mxu0 %v1814_v0  ;;  %v400_v36 = vld [vmem:[#allocation8 + $0x20] sm:$0xff] }
  0xcd   : > { %1320 = vmatprep.subr.bf16.mxu1 %v1814_v0 }
  0xcf   : > { %1367 = vmatpush3.bf16.msra.mxu0 %v1342_v47 }
  0xd0   : > { %1322 = vmatpush3.bf16.msra.mxu1 %v1321_v42  ;;  %1368 = vmatprep.subr.bf16.mxu0 %v1814_v0  ;;  %v404_v42 = vld [vmem:[#allocation8 + $0x40] sm:$0xff] }
  0xd1   : > { %1323 = vmatprep.subr.bf16.mxu1 %v1814_v0 }
  0xd3   : > { %1157 = vmatmul.mubr.f32.vlgmr.msra.gmra.mrb[0].mxu1 %v428_v46  ;;  %1370 = vmatpush3.bf16.msra.mxu0 %v1345_v50 }
  0xd4   : > { %1191 = vmatprep.mubr.msk.f32.mxu1 %vm1815_vm0, %v1816_v1  ;;  %1371 = vmatprep.subr.bf16.mxu0 %v1814_v0 }
  0xd9   : > { %1325 = vmatpush3.bf16.xpose.msra.mxu1 %v2148_v14  ;;  %v1378_v14 = vpack.c.bf16 %v417_v13, %v416_v12 }
  0xda   : > { %1326 = vmatprep.subr.bf16.mxu1 %v1814_v0 }
  0xe1   : > { %1328 = vmatpush3.bf16.xpose.msra.mxu1 %v1327_v20  ;;  %v1384_v20 = vpack.c.bf16 %v421_v19, %v420_v18 }
  0xe2   : > { %1329 = vmatprep.subr.bf16.mxu1 %v1814_v0 }
  0xe9   : > { %1331 = vmatpush3.bf16.xpose.msra.mxu1 %v1330_v26  ;;  %v1390_v26 = vpack.c.bf16 %v425_v25, %v424_v24 }
  0xea   : > { %1332 = vmatprep.subr.bf16.mxu1 %v1814_v0 }
  0xf1   : > { %1334 = vmatpush3.bf16.xpose.msra.mxu1 %v1333_v32  ;;  %v1396_v32 = vpack.c.bf16 %v397_v31, %v396_v30 }
  0xf2   : > { %1335 = vmatprep.subr.bf16.mxu1 %v1814_v0 }
  0xf9   : > { %1337 = vmatpush3.bf16.xpose.msra.mxu1 %v1336_v38  ;;  %v1402_v38 = vpack.c.bf16 %v401_v37, %v400_v36 }
  0xfa   : > { %1338 = vmatprep.subr.bf16.mxu1 %v1814_v0 }
 0x101   : > { %1340 = vmatpush3.bf16.xpose.msra.mxu1 %v1339_v43  ;;  %v405_v43 = vld [vmem:[#allocation8 + $0x48] sm:$0xff] }
 0x102   : > { %1341 = vmatprep.subr.bf16.mxu1 %v1814_v0  ;;  %v1408_v44 = vpack.c.bf16 %v405_v43, %v404_v42 }
 0x109   : > { %1343 = vmatpush3.bf16.xpose.msra.mxu1 %v1342_v47  ;;  %v408_v47 = vld [vmem:[#allocation8 + $0x60] sm:$0xff] }
 0x10a   : > { %1344 = vmatprep.subr.bf16.mxu1 %v1814_v0  ;;  %v1414_v49 = vpack.c.bf16 %v409_v48, %v408_v47 }
 0x111   : > { %1346 = vmatpush3.bf16.xpose.msra.mxu1 %v1345_v50  ;;  %v410_v50 = vld [vmem:[#allocation8 + $0x70] sm:$0xff] }
 0x1a6   : > { %v2192_v51 = vpop.f32.mrb[0].mxu1 }
 0x1a7   : > { %v1158_v52 = vpop.f32.mrb[1].mxu1  ;;  %1192 = vmatmul.mubr.f32.vlgmr.msra.gmra.mrb[2].mxu1 %v2192_v51 }
 0x27a   : > { %v581_v55 = vpop.f32.mrb[2].mxu1 }
 0x27b   : > { %v1193_v56 = vpop.f32.mrb[3].mxu1  ;;  %v588_v57 = vsel %vm587_vm1, %v581_v55, -1e+30 }
 0x27c   : > { %589 = vmax.xlane.f32.xlu0 %v588_v57 }
 0x309   : > { %v590_v58 = vpop.xlane.xlu0 %589 }
 0x30a   : > { %v591_v59 = vsub.f32 %v588_v57, %v590_v58 }
 0x30c   : > { %v592_v60 = vmul.f32 1.442695, %v591_v59 }
 0x30e   : > { %1529 = vpow2.f32 %v592_v60 }
 0x318   : > { %v1530_v61 = vpop.eup %1529 }
 0x319   : > { %594 = vadd.xlane.f32.xlu0 %v1530_v61 }
 0x3a6   : > { %v595_v62 = vpop.xlane.xlu0 %594 }
 0x3a7   : > { %1531 = vrcp.f32 %v595_v62 }
 0x3b1   : > { %v1532_v63 = vpop.eup %1531 }
 0x3b2   : > { %v597_v2 = vmul.f32 %v1532_v63, %v595_v62 }
 0x3b4   : > { %v598_v3 = vsub.f32 2.0, %v597_v2 }
 0x3b6   : > { %v599_v6 = vmul.f32 %v1532_v63, %v598_v3 }
 0x3b8   : > { %v600_v8 = vmul.f32 %v1530_v61, %v599_v6 }
 0x3ba   : > { %1227 = vmatmul.mubr.f32.vlgmr.msra.gmra.mrb[0].mxu0 %v600_v8  ;;  %813 = vst [vmem:[%s379_s27] sm:$0xff] %v600_v8 }
 0x3bb   : > { %1373 = vmatpush3.bf16.msra.mxu0 %v1372_v7  ;;  %1261 = vmatprep.mubr.msk.f32.mxu0 %vm1815_vm0, %v1816_v1 }
 0x3bc   : > { %1374 = vmatprep.subr.bf16.mxu0 %v1814_v0 }
 0x3bf   : > { %1376 = vmatpush3.bf16.msra.mxu0 %v1375_v11 }
 0x3c0   : > { %1377 = vmatprep.subr.bf16.mxu0 %v1814_v0 }
 0x3c3   : > { %1379 = vmatpush3.bf16.msra.mxu0 %v1378_v14 }
 0x3c4   : > { %1380 = vmatprep.subr.bf16.mxu0 %v1814_v0 }
 0x3c7   : > { %1382 = vmatpush3.bf16.msra.mxu0 %v1381_v17 }
 0x3c8   : > { %1383 = vmatprep.subr.bf16.mxu0 %v1814_v0 }
 0x3cb   : > { %1385 = vmatpush3.bf16.msra.mxu0 %v1384_v20 }
 0x3cc   : > { %1386 = vmatprep.subr.bf16.mxu0 %v1814_v0 }
 0x3cf   : > { %1388 = vmatpush3.bf16.msra.mxu0 %v1387_v23 }
 0x3d0   : > { %1389 = vmatprep.subr.bf16.mxu0 %v1814_v0 }
 0x3d3   : > { %1391 = vmatpush3.bf16.msra.mxu0 %v1390_v26 }
 0x3d4   : > { %1392 = vmatprep.subr.bf16.mxu0 %v1814_v0 }
 0x3d7   : > { %1394 = vmatpush3.bf16.msra.mxu0 %v1393_v29 }
 0x3d8   : > { %1395 = vmatprep.subr.bf16.mxu0 %v1814_v0 }
 0x3da   : > { %1262 = vmatmul.mubr.f32.vlgmr.msra.gmra.mrb[2].mxu0 %v2192_v51  ;;  %v411_v51 = vld [vmem:[#allocation8 + $0x78] sm:$0xff] }
 0x3db   : > { %1397 = vmatpush3.bf16.msra.mxu0 %v1396_v32  ;;  %1296 = vmatprep.mubr.msk.f32.mxu0 %vm1815_vm0, %v1816_v1  ;;  %v406_v1 = vld [vmem:[#allocation8 + $0x50] sm:$0xff]  ;;  %v1417_v52 = vpack.c.bf16 %v411_v51, %v410_v50 }
 0x3dc   : > { %1398 = vmatprep.subr.bf16.mxu0 %v1814_v0  ;;  %v1411_v46 = vpack.c.bf16 %v407_v45, %v406_v1 }
 0x3df   : > { %1400 = vmatpush3.bf16.msra.mxu0 %v1399_v35 }
 0x3e0   : > { %1401 = vmatprep.subr.bf16.mxu0 %v1814_v0 }
 0x3e3   : > { %1403 = vmatpush3.bf16.msra.mxu0 %v1402_v38 }
 0x3e4   : > { %1404 = vmatprep.subr.bf16.mxu0 %v1814_v0 }
 0x3e7   : > { %1406 = vmatpush3.bf16.msra.mxu0 %v1405_v41 }
 0x3e8   : > { %1407 = vmatprep.subr.bf16.mxu0 %v1814_v0 }
 0x3eb   : > { %1409 = vmatpush3.bf16.msra.mxu0 %v1408_v44 }
 0x3ec   : > { %1410 = vmatprep.subr.bf16.mxu0 %v1814_v0 }
 0x3ef   : > { %1412 = vmatpush3.bf16.msra.mxu0 %v1411_v46 }
 0x3f0   : > { %1413 = vmatprep.subr.bf16.mxu0 %v1814_v0 }
 0x3f3   : > { %1415 = vmatpush3.bf16.msra.mxu0 %v1414_v49 }
 0x3f4   : > { %1416 = vmatprep.subr.bf16.mxu0 %v1814_v0 }
 0x3f7   : > { %1418 = vmatpush3.bf16.msra.mxu0 %v1417_v52 }
 0x48d   : > { %v667_v53 = vpop.f32.mrb[0].mxu0 }
 0x48e   : > { %v1228_v54 = vpop.f32.mrb[1].mxu0  ;;  %1297 = vmatmul.mubr.f32.vlgmr.msra.gmra.mrb[2].mxu0 %v667_v53 }
 0x48f   : > { %1692 = shalt.err (!%p1689_p11)
}
 0x490   : > { %s1693_s12 = scalar_lea.hbm %s2224_s15, 128  ;;  %s1697_s18 = scalar_lea.hbm %s2307_s6, 256 }
 0x491   : > { %p1694_p12 = scmp.ne.s32.totalorder %s2224_s15, %s1693_s12  ;;  %p1698_p9 = scmp.lt.u32.totalorder %s2224_s15, %s2307_s6 }
 0x492   : > { %p1699_p0 = scmp.lt.u32.totalorder %s1697_s18, %s1693_s12  ;;  %p1701_p4 = scmp.lt.u32.totalorder %s1693_s12, %s2224_s15 }
 0x493   : > { %p1695_p6 = pnand %p1694_p12, %p2010_p10 }
 0x494   : > { %p1700_p2 = por %p1699_p0, %p1698_p9 }
 0x495   : > { %p1696_p7 = pneg %p1695_p6 }
 0x496   : > { %p1702_p8 = por %p1701_p4, %p1700_p2 }
 0x498   : > { %p1703_p1 = pnand %p1702_p8, %p1696_p7 }
 0x49a   : > { %1706 = shalt.err (!%p1703_p1)
}
 0x49b   : > { %1438 = dma.vmem_to_hbm [thread:$0]  (%p2010_p10), %s849_s9, 128, %s2224_s15, %s820_s17  }
 0x49c   : > { %s372_s20 = scalar_lea.vmem [#allocation11], %s2115_s11  ;;  %s2252_s8 = scalar_lea.hbm %s2306_s5, %s1034_s29 }
 0x49d   : > { %s834_s28 = sshll.u32 %s372_s20, 4  ;;  %s815_s21 = scalar_lea.sflag [#allocation4], %s2112_s16  ;;  %s2254_s28 = int_to_ptr.vmem [resolvable:$true] %s834_s28 }
 0x49e   : > { %s1707_s15 = scalar_lea.vmem %s2254_s28, 128  ;;  %s1818_s11 = smov [#allocation11]  }
 0x49f   : > { %p1708_p13 = scmp.ne.s32.totalorder %s2254_s28, %s1707_s15  ;;  %s1711_s24 = sshll.u32 %s1818_s11, 4  ;;  %s1712_s24 = int_to_ptr.vmem [resolvable:$false] %s1711_s24 }
 0x4a0   : > { %s1713_s9 = scalar_lea.vmem %s1712_s24, 256  ;;  %p1714_p11 = scmp.lt.s32.totalorder %s2254_s28, %s1712_s24 }
 0x4a1   : > { %p1709_p3 = pnand %p1708_p13, %p2010_p10  ;;  %p1715_p12 = scmp.lt.s32.totalorder %s1713_s9, %s1707_s15 }
 0x4a3   : > { %p1710_p5 = pneg %p1709_p3  ;;  %p1716_p6 = por %p1715_p12, %p1714_p11 }
 0x4a5   : > { %p1717_p7 = pnand %p1716_p6, %p1710_p5 }
 0x561   : > { %v807_v0 = vpop.f32.mrb[2].mxu0 }
 0x562   : > { %1533 = vtanh.f32 %v807_v0  ;;  %v1298_v55 = vpop.f32.mrb[3].mxu0 }
 0x56c   : > { %v1534_v56 = vpop.eup %1533 }
 0x56d   : > { %812 = vst [vmem:[%s372_s20] sm:$0xff] %v1534_v56 }
 0x56e   : > { %1720 = shalt.err (!%p1717_p7)
}
 0x56f   : > { %s1721_s16 = scalar_lea.hbm %s2252_s8, 128  ;;  %s1725_s12 = scalar_lea.hbm %s2306_s5, 256 }
 0x570   : > { %p1722_p9 = scmp.ne.s32.totalorder %s2252_s8, %s1721_s16  ;;  %p1726_p4 = scmp.lt.u32.totalorder %s2252_s8, %s2306_s5 }
 0x571   : > { %p1727_p8 = scmp.lt.u32.totalorder %s1725_s12, %s1721_s16  ;;  %p1729_p13 = scmp.lt.u32.totalorder %s1721_s16, %s2252_s8 }
 0x572   : > { %p1723_p0 = pnand %p1722_p9, %p2010_p10 }
 0x573   : > { %p1728_p1 = por %p1727_p8, %p1726_p4 }
 0x574   : > { %p1724_p2 = pneg %p1723_p0 }
 0x575   : > { %p1730_p3 = por %p1729_p13, %p1728_p1 }
 0x577   : > { %p1731_p5 = pnand %p1730_p3, %p1724_p2 }
 0x579   : > { %1734 = shalt.err (!%p1731_p5)
}
 0x57a   : > { %1437 = dma.vmem_to_hbm [thread:$0]  (%p2010_p10), %s2254_s28, 128, %s2252_s8, %s815_s21  }
 0x57b PF: > { %s2338_s18 = sld [smem:[#allocation20_spill]]  ;;  %s2339_s13 = sld [smem:[#allocation21_spill]] }
 0x57c   : > { %p2341_p12 = scmp.ge.s32.totalorder %s1805_s26, 2 }
 0x581   : > { %s860_s27 = sand.u32 1, %s2338_s18   ;;  %p2340_p11 = scmp.ne.s32.totalorder %s2339_s13, 0 }
 0x582   : > { %s861_s20 = scalar_lea.sflag [#allocation4], %s860_s27 }
 0x583   : > { %p1459_p6 = pnand %p2341_p12, %p2340_p11 }
 0x585   : > { %1776 = dma.done.wait (!%p1459_p6), %s861_s20, 128  }
 0x586   : > { %1778 = vsyncadd (!%p1459_p6), %s861_s20, 4294967168  ;;  %s870_s14 = scalar_lea.sflag [#allocation13], %s860_s27 }
 0x587   : > { %1780 = dma.done.wait (!%p1459_p6), %s870_s14, 128  }
 0x588   : > { %1782 = vsyncadd (!%p1459_p6), %s870_s14, 4294967168  ;;  %s30_s26 = sadd.s32 1, %s1805_s26   ;;  %s2342_s21 = smov %s1789_s22 }
 0x589   : > { %p27_p7 = scmp.ge.s32.totalorder %s30_s26, 4   ;;  %s2343_s22 = smov %s1793_s23 }
 0x58a   : > { %s2344_s23 = smov %s2025_s19  ;;  %s2345_s24 = smov %s1801_s25 }
 0x58b   : > { %s2346_s25 = smov %s2348_s10  ;;  %29 = sbr.rel (!%p27_p7) target bundleno = 14 (0xe), region = 127 }
 0x592   :  { %875 = vsyncpa [#allocation3], 1 }
 0x593   :  { %877 = vsyncpa [#allocation3 + $0x1], 1 }
 0x594   :  { %878 = vsyncpa [#allocation6], 1 }
 0x595   :  { %880 = vsyncpa [#allocation6 + $0x1], 1 }
 0x596   :  { %881 = vsyncpa [#allocation9], 1 }
 0x597   :  { %882 = vsyncpa [#allocation4], 1 }
 0x598   :  { %884 = vsyncpa [#allocation4 + $0x1], 1 }
 0x599   :  { %885 = vsyncpa [#allocation13], 1 }
 0x59a   :  { %887 = vsyncpa [#allocation13 + $0x1], 1 }

</bundles_post_ra>
